<compile_context>
chip_gen: v7x
topology: tpu7x:2x2x1
jax: 0.10.0
libtpu: 0.0.40
codegen_flags: <defaults>
</compile_context>

<pallas_src>
import functools

import jax
import jax.numpy as jnp
from jax.experimental import pallas as pl
from jax.experimental.pallas import tpu as pltpu

_SUBLANE = 8


def _round_up(n, m):
    return ((n + m - 1) // m) * m


def value_net_kernel(x_ref, w1_ref, b1_ref, w2_ref, b2_ref, w3_ref, b3_ref,
                     out_ref):
    cdt = w1_ref.dtype  # MXU input dtype (f32 or bf16); accumulation is f32.
    # fc1 + ReLU
    h = jnp.dot(x_ref[...], w1_ref[...], preferred_element_type=jnp.float32)
    h = jnp.maximum(h + b1_ref[...], 0.0)
    # fc2 + ReLU
    h = jnp.dot(h.astype(cdt), w2_ref[...], preferred_element_type=jnp.float32)
    h = jnp.maximum(h + b2_ref[...], 0.0)
    # fc3 (value head, no activation); compact (tb, out_size) store.
    h = jnp.dot(h.astype(cdt), w3_ref[...], preferred_element_type=jnp.float32)
    out_ref[...] = (h + b3_ref[...]).astype(out_ref.dtype)


@functools.partial(jax.jit, static_argnames=("tile_b", "compute_dtype"))
def value_network_forward(x, params, *, tile_b=4096,
                          compute_dtype=jnp.bfloat16):
    """x: [B, input_size]; params: w1,b1,w2,b2,w3,b3 ([in,out] / [1,out]).

    Returns [B, output_size] float32, same semantics as the PyTorch module.
    """
    w1, b1 = params["w1"], params["b1"]
    w2, b2 = params["w2"], params["b2"]
    w3, b3 = params["w3"], params["b3"]
    B, in_size = x.shape
    out_size = w3.shape[1]

    cdt = jnp.dtype(compute_dtype)
    xk = x.astype(cdt)
    w1k, w2k, w3k = w1.astype(cdt), w2.astype(cdt), w3.astype(cdt)
    b1f, b2f, b3f = (b.astype(jnp.float32) for b in (b1, b2, b3))

    # Batch tile: multiple of 8 (sublane), capped at ceil(B/2) so the grid has
    # at least 2 steps (keeps both v7x TensorCores busy under "parallel").
    half = -(-B // 2)
    tb = max(_SUBLANE, _round_up(min(tile_b, half), _SUBLANE))
    grid = (pl.cdiv(B, tb),)

    # Weights/biases: constant index_map => DMA'd once, VMEM-resident.
    const = lambda a: pl.BlockSpec(a.shape, lambda i: (0,) * a.ndim)

    out = pl.pallas_call(
        value_net_kernel,
        out_shape=jax.ShapeDtypeStruct((B, out_size), jnp.float32),
        grid=grid,
        in_specs=[
            pl.BlockSpec((tb, in_size), lambda i: (i, 0)),  # x, batch-tiled
            const(w1k), const(b1f),
            const(w2k), const(b2f),
            const(w3k), const(b3f),
        ],
        out_specs=pl.BlockSpec((tb, out_size), lambda i: (i, 0)),
        compiler_params=pltpu.CompilerParams(
            dimension_semantics=("parallel",),
        ),
    )(xk, w1k, b1f, w2k, b2f, w3k, b3f)
    return out


def init_params(key, input_size, hidden_size, output_size):
    """Deterministic init matching nn.Linear's U(-1/sqrt(in), 1/sqrt(in))."""
    ks = jax.random.split(key, 6)

    def lin(kw, kb, fan_in, fan_out):
        bound = 1.0 / jnp.sqrt(fan_in)
        w = jax.random.uniform(kw, (fan_in, fan_out), jnp.float32,
                               minval=-bound, maxval=bound)
        b = jax.random.uniform(kb, (1, fan_out), jnp.float32,
                               minval=-bound, maxval=bound)
        return w, b

    w1, b1 = lin(ks[0], ks[1], input_size, hidden_size)
    w2, b2 = lin(ks[2], ks[3], hidden_size, hidden_size)
    w3, b3 = lin(ks[4], ks[5], hidden_size, output_size)
    return {"w1": w1, "b1": b1, "w2": w2, "b2": b2, "w3": w3, "b3": b3}


if __name__ == "__main__":
    # Make the pure-JAX reference (and the f32 kernel path) use true f32
    # matmuls so the strict comparison is meaningful on TPU.
    jax.config.update("jax_default_matmul_precision", "highest")

    # CartPole-like sizes: state dim 4, hidden 32, scalar value head.
    # Batch of 200 exercises the 2-step grid and the partial trailing tile.
    input_size, hidden_size, output_size = 4, 32, 1
    batch = 200

    key = jax.random.PRNGKey(0)
    k_x, k_p = jax.random.split(key)
    x = jax.random.normal(k_x, (batch, input_size), dtype=jnp.float32)
    params = init_params(k_p, input_size, hidden_size, output_size)

    # Pure-JAX f32 reference.
    h = jnp.maximum(x @ params["w1"] + params["b1"], 0.0)
    h = jnp.maximum(h @ params["w2"] + params["b2"], 0.0)
    ref = h @ params["w3"] + params["b3"]

    # f32 kernel path: near-exact vs. the reference.
    out_f32 = value_network_forward(x, params, compute_dtype=jnp.float32)
    out_f32 = jax.block_until_ready(out_f32)
    assert out_f32.shape == (batch, output_size)
    assert jnp.allclose(out_f32, ref, atol=1e-3, rtol=1e-3)

    # Default bf16-input path (v6e/v7x-friendly); f32 accumulate -> loose tol.
    out_bf16 = jax.block_until_ready(value_network_forward(x, params))
    assert out_bf16.shape == (batch, output_size)
    assert jnp.allclose(out_bf16, ref, atol=8e-2, rtol=8e-2)

    print("KERNEL_OK")
</pallas_src>

<mosaic_0001>
module attributes {stable_mosaic.version = 11 : i64} {
  func.func @value_net_kernel(%arg0: i32, %arg1: memref<104x4xf32, #tpu.memory_space<vmem>>, %arg2: memref<4x32xf32, #tpu.memory_space<vmem>>, %arg3: memref<1x32xf32, #tpu.memory_space<vmem>>, %arg4: memref<32x32xf32, #tpu.memory_space<vmem>>, %arg5: memref<1x32xf32, #tpu.memory_space<vmem>>, %arg6: memref<32x1xf32, #tpu.memory_space<vmem>>, %arg7: memref<1x1xf32, #tpu.memory_space<vmem>>, %arg8: memref<104x1xf32, #tpu.memory_space<vmem>>) attributes {dimension_semantics = [#tpu.dimension_semantics<parallel>], iteration_bounds = array<i64: 2>, scalar_prefetch = 0 : i64, scratch_operands = 0 : i64, tpu.core_type = #tpu.core_type<tc>, window_params = [{transform_indices = @transform_0, window_bounds = array<i64: 104, 4>}, {pipeline_mode = #tpu.pipeline_mode<synchronous>, transform_indices = @transform_1, window_bounds = array<i64: 4, 32>}, {pipeline_mode = #tpu.pipeline_mode<synchronous>, transform_indices = @transform_2, window_bounds = array<i64: 1, 32>}, {pipeline_mode = #tpu.pipeline_mode<synchronous>, transform_indices = @transform_3, window_bounds = array<i64: 32, 32>}, {pipeline_mode = #tpu.pipeline_mode<synchronous>, transform_indices = @transform_4, window_bounds = array<i64: 1, 32>}, {pipeline_mode = #tpu.pipeline_mode<synchronous>, transform_indices = @transform_5, window_bounds = array<i64: 32, 1>}, {pipeline_mode = #tpu.pipeline_mode<synchronous>, transform_indices = @transform_6, window_bounds = array<i64: 1, 1>}, {transform_indices = @transform_7, window_bounds = array<i64: 104, 1>}]} {
    %c0 = arith.constant 0 : index
    %c0_0 = arith.constant 0 : index
    %0 = vector.load %arg1[%c0, %c0_0] : memref<104x4xf32, #tpu.memory_space<vmem>>, vector<104x4xf32>
    %c0_1 = arith.constant 0 : index
    %c0_2 = arith.constant 0 : index
    %1 = vector.load %arg2[%c0_1, %c0_2] : memref<4x32xf32, #tpu.memory_space<vmem>>, vector<4x32xf32>
    %cst = arith.constant dense<0.000000e+00> : vector<104x32xf32>
    %2 = tpu.matmul %0, %1, %cst {dimension_numbers = #tpu.dot_dimension_numbers<[1], [0], [0], [1], [0, 0, 1, 1], [], []>, precision = #tpu.contract_precision<fp32>} : vector<104x4xf32>, vector<4x32xf32>, vector<104x32xf32> -> vector<104x32xf32>
    %c0_3 = arith.constant 0 : index
    %c0_4 = arith.constant 0 : index
    %3 = vector.load %arg3[%c0_3, %c0_4] : memref<1x32xf32, #tpu.memory_space<vmem>>, vector<1x32xf32>
    %4 = vector.broadcast %3 : vector<1x32xf32> to vector<104x32xf32>
    %5 = arith.addf %2, %4 : vector<104x32xf32>
    %cst_5 = arith.constant 0.000000e+00 : f32
    %6 = vector.broadcast %cst_5 : f32 to vector<104x32xf32>
    %7 = arith.maximumf %5, %6 : vector<104x32xf32>
    %c0_6 = arith.constant 0 : index
    %c0_7 = arith.constant 0 : index
    %8 = vector.load %arg4[%c0_6, %c0_7] : memref<32x32xf32, #tpu.memory_space<vmem>>, vector<32x32xf32>
    %cst_8 = arith.constant dense<0.000000e+00> : vector<104x32xf32>
    %9 = tpu.matmul %7, %8, %cst_8 {dimension_numbers = #tpu.dot_dimension_numbers<[1], [0], [0], [1], [0, 0, 1, 1], [], []>, precision = #tpu.contract_precision<fp32>} : vector<104x32xf32>, vector<32x32xf32>, vector<104x32xf32> -> vector<104x32xf32>
    %c0_9 = arith.constant 0 : index
    %c0_10 = arith.constant 0 : index
    %10 = vector.load %arg5[%c0_9, %c0_10] : memref<1x32xf32, #tpu.memory_space<vmem>>, vector<1x32xf32>
    %11 = vector.broadcast %10 : vector<1x32xf32> to vector<104x32xf32>
    %12 = arith.addf %9, %11 : vector<104x32xf32>
    %cst_11 = arith.constant 0.000000e+00 : f32
    %13 = vector.broadcast %cst_11 : f32 to vector<104x32xf32>
    %14 = arith.maximumf %12, %13 : vector<104x32xf32>
    %c0_12 = arith.constant 0 : index
    %c0_13 = arith.constant 0 : index
    %15 = vector.load %arg6[%c0_12, %c0_13] : memref<32x1xf32, #tpu.memory_space<vmem>>, vector<32x1xf32>
    %cst_14 = arith.constant dense<0.000000e+00> : vector<104x1xf32>
    %16 = tpu.matmul %14, %15, %cst_14 {dimension_numbers = #tpu.dot_dimension_numbers<[1], [0], [0], [1], [0, 0, 1, 1], [], []>, precision = #tpu.contract_precision<fp32>} : vector<104x32xf32>, vector<32x1xf32>, vector<104x1xf32> -> vector<104x1xf32>
    %c0_15 = arith.constant 0 : index
    %c0_16 = arith.constant 0 : index
    %17 = vector.load %arg7[%c0_15, %c0_16] : memref<1x1xf32, #tpu.memory_space<vmem>>, vector<1x1xf32>
    %18 = vector.broadcast %17 : vector<1x1xf32> to vector<104x1xf32>
    %19 = arith.addf %16, %18 : vector<104x1xf32>
    %c0_17 = arith.constant 0 : index
    %c0_18 = arith.constant 0 : index
    %20 = vector.load %arg8[%c0_17, %c0_18] : memref<104x1xf32, #tpu.memory_space<vmem>>, vector<104x1xf32>
    tpu.vector_store %arg8[%c0_17, %c0_18], %19 {strides = array<i32>} : memref<104x1xf32, #tpu.memory_space<vmem>>, vector<104x1xf32>,
    return
  }
  func.func @transform_0(%arg0: i32) -> (i32, i32) {
    %c0_i32 = arith.constant 0 : i32
    %c0_i32_0 = arith.constant 0 : i32
    return %arg0, %c0_i32 : i32, i32
  }
  func.func @transform_1(%arg0: i32) -> (i32, i32) {
    %c0_i32 = arith.constant 0 : i32
    %c0_i32_0 = arith.constant 0 : i32
    %c0_i32_1 = arith.constant 0 : i32
    return %c0_i32, %c0_i32_0 : i32, i32
  }
  func.func @transform_2(%arg0: i32) -> (i32, i32) {
    %c0_i32 = arith.constant 0 : i32
    %c0_i32_0 = arith.constant 0 : i32
    %c0_i32_1 = arith.constant 0 : i32
    return %c0_i32, %c0_i32_0 : i32, i32
  }
  func.func @transform_3(%arg0: i32) -> (i32, i32) {
    %c0_i32 = arith.constant 0 : i32
    %c0_i32_0 = arith.constant 0 : i32
    %c0_i32_1 = arith.constant 0 : i32
    return %c0_i32, %c0_i32_0 : i32, i32
  }
  func.func @transform_4(%arg0: i32) -> (i32, i32) {
    %c0_i32 = arith.constant 0 : i32
    %c0_i32_0 = arith.constant 0 : i32
    %c0_i32_1 = arith.constant 0 : i32
    return %c0_i32, %c0_i32_0 : i32, i32
  }
  func.func @transform_5(%arg0: i32) -> (i32, i32) {
    %c0_i32 = arith.constant 0 : i32
    %c0_i32_0 = arith.constant 0 : i32
    %c0_i32_1 = arith.constant 0 : i32
    return %c0_i32, %c0_i32_0 : i32, i32
  }
  func.func @transform_6(%arg0: i32) -> (i32, i32) {
    %c0_i32 = arith.constant 0 : i32
    %c0_i32_0 = arith.constant 0 : i32
    %c0_i32_1 = arith.constant 0 : i32
    return %c0_i32, %c0_i32_0 : i32, i32
  }
  func.func @transform_7(%arg0: i32) -> (i32, i32) {
    %c0_i32 = arith.constant 0 : i32
    %c0_i32_0 = arith.constant 0 : i32
    return %arg0, %c0_i32 : i32, i32
  }
}

</mosaic_0001>

<bundles_post_ra>
// kernel: value_network_forward.1
= control target key start
LH: loop header
LB: loop body
LE: loop exit
PB: predicated region body
PF: predicated region fallthrough
CT: control target
= control target key end

     0   :  { %s7031_s0 = inlined_call_operand.vmem [shape: f32[200,4], index: 0, kind: input, shape index: {}]   ;;  %s7032_s1 = inlined_call_operand.vmem [shape: f32[4,32], index: 1, kind: input, shape index: {}]   ;;  %s7033_s2 = inlined_call_operand.vmem [shape: f32[1,32], index: 2, kind: input, shape index: {}]   ;;  %s7034_s3 = inlined_call_operand.vmem [shape: f32[32,32], index: 3, kind: input, shape index: {}]   ;;  %s7035_s4 = inlined_call_operand.vmem [shape: f32[1,32], index: 4, kind: input, shape index: {}]   ;;  %s7036_s5 = inlined_call_operand.vmem [shape: f32[32,1], index: 5, kind: input, shape index: {}]   ;;  %s7037_s6 = inlined_call_operand.<no memory space> [shape: f32[1,1], index: 6, kind: input, shape index: {}]   ;;  %s7038_s7 = inlined_call_operand.vmem [shape: f32[200,1], index: 7, kind: output, shape index: {}]  }
   0x1   :  { %v12_v0 = vstv %s7037_s6 }
   0x2   :  { %13 = vst [vmem:[#allocation2] sm:$0x1] %v12_v0 }
   0x3   :  { %s5575_s26 = smov 0   ;;  %s5577_s27 = smov 0  }
   0x4   :  { %s5579_s28 = smov 0  }
   0x5 LB: > { %s5588_s6 = sadd.s32 4294967295, %s5495_s28   ;;  %s5590_s29 = sadd.s32 1, %s5495_s28   ;;  %s5495_s28 = sphi %s5579_s28, %s7045_s28   ;;  %s5491_s27 = sphi %s5577_s27, %s7044_s27   ;;  %s5487_s26 = sphi %s5575_s26, %s7043_s26  }
   0x6   : > { %s175_s30 = ssub.s32 %s5495_s28, %s5590_s29  ;;  %s178_s8 = sadd.s32 1, %s5491_s27 }
   0x7   : > { %p176_p0 = scmp.eq.s32.totalorder %s175_s30, 0  ;;  %p188_p1 = scmp.ne.s32.totalorder %s5491_s27, %s5487_s26 }
   0x8   : > { %p189_p2 = scmp.eq.s32.totalorder %s5588_s6, 1  ;;  %p3740_p3 = scmp.ge.s32.totalorder %s5495_s28, 1 }
   0x9   : > { %s5598_s9 = scalar_select %p176_p0, %s5491_s27, %s178_s8  }
   0xa   : > { %p5600_p4 = por %p189_p2, %p188_p1  ;;  %p248_p5 = scmp.lt.s32.totalorder %s5495_s28, 3 }
   0xc   : > { %p249_p6 = pnand %p3740_p3, %p248_p5 }
   0xd   : > { %v315_v1 = vld [vmem:[%s7032_s1] sm:$0xf] (!%p249_p6)  ;;  %vm363_vm0 = vcmask (!%p249_p6), 1043456   ;;  %s5608_s13 = smul.u32 (!%p249_p6), 13, %s5588_s6  ;;  %v5529_v2 = vmov (!%p249_p6), 0.0   ;;  %vm5530_vm1 = vmmov (!%p249_p6), 0  }
   0xe   : > { %252 = sbr.rel (%p249_p6) target bundleno = 1441 (0x5a1), region = 48  ;;  %4169 = vmatprep.subr.mxu0 (!%p249_p6), %v5529_v2  ;;  %v365_v3 = vsel (!%p249_p6), %vm363_vm0, %v315_v1, 0  ;;  %4171 = vmatprep.mubr.msk.f32.mxu0 (!%p249_p6), %vm5530_vm1, %v5529_v2  ;;  %vm323_vm2 = vcmask (!%p249_p6), 31744   ;;  %vm1353_vm3 = vcmask (!%p249_p6), 261120   ;;  %s280_s22 = sand.u32 (!%p249_p6), 1, %s5487_s26   ;;  %vm3458_vm4 = vcmask (!%p249_p6), 7168  }
   0xf   : > { %v5613_v4 = vand.u32 (!%p249_p6), 4294901760, %v365_v3  ;;  %p288_p7 = scmp.lt.s32.totalorder (!%p249_p6), %s5608_s13, 24  ;;  %4046 = vmatprep.subr.mxu1 (!%p249_p6), %v5529_v2  ;;  %4048 = vmatprep.mubr.msk.f32.mxu1 (!%p249_p6), %vm5530_vm1, %v5529_v2  ;;  %s5344_s23 = smul.u32 (!%p249_p6), 104, %s280_s22 }
  0x11   : > { %4170 = vmatpush3.msra.mxu0 (!%p249_p6), %v5613_v4  ;;  %4047 = vmatpush3.msra.mxu1 (!%p249_p6), %v5613_v4  ;;  %v5623_v5 = vsub.f32 (!%p249_p6), %v365_v3, %v5613_v4  ;;  %s6914_s24 = scalar_lea.vmem (!%p249_p6), [#allocation3], %s5344_s23  }
  0x12   : > { %4087 = vmatprep.subr.mxu1 (!%p249_p6), %v5529_v2  ;;  %4210 = vmatprep.subr.mxu0 (!%p249_p6), %v5529_v2 }
  0x13   : > { %v566_v10 = vand.u32 (!%p249_p6), 4294901760, %v5623_v5 }
  0x15   : > { %s289_s14 = scalar_select %p288_p7, %s5608_s13, 24  ;;  %v567_v25 = vsub.f32 %v5623_v5, %v566_v10 }
  0x16   : > { %s3480_s26 = ssub.s32 (%p5600_p4), 25, %s5608_s13  ;;  %s3757_s25 = smul.u32 (%p5600_p4), 104, %s5588_s6 }
  0x17   : > { %s3741_s15 = sshll.u32 %s289_s14, 3  ;;  %v568_v35 = vand.u32 4294901760, %v567_v25  ;;  %p3481_p8 = scmp.lt.s32.totalorder (%p5600_p4), %s3480_s26, 13 }
  0x18   : > { %s5630_s18 = scalar_lea.vmem %s7031_s0, %s3741_s15  ;;  %s6949_s8 = scalar_lea.vmem (%p5600_p4), %s7038_s7, %s3757_s25  }
  0x19   : > { %v302_v6 = vld [vmem:[%s5630_s18] sm:$0xff]  ;;  %v303_v7 = vld [vmem:[%s5630_s18 + $0x8] sm:$0xff]  ;;  %v304_v8 = vld [vmem:[%s5630_s18 + $0x10] sm:$0xff] }
  0x1a   : > { %v325_v9 = vsel %vm323_vm2, %v302_v6, 0  ;;  %v328_v11 = vsel %vm323_vm2, %v303_v7, 0  ;;  %v331_v12 = vsel %vm323_vm2, %v304_v8, 0  ;;  %v305_v13 = vld [vmem:[%s5630_s18 + $0x18] sm:$0xff]  ;;  %v306_v14 = vld [vmem:[%s5630_s18 + $0x20] sm:$0xff]  ;;  %v307_v24 = vld [vmem:[%s5630_s18 + $0x28] sm:$0xff] }
  0x1b   : > { %v5641_v15 = vand.u32 4294901760, %v325_v9  ;;  %v5643_v16 = vand.u32 4294901760, %v328_v11  ;;  %v5645_v17 = vand.u32 4294901760, %v331_v12  ;;  %v334_v18 = vsel %vm323_vm2, %v305_v13, 0  ;;  %v308_v34 = vld [vmem:[%s5630_s18 + $0x30] sm:$0xff]  ;;  %v309_v43 = vld [vmem:[%s5630_s18 + $0x38] sm:$0xff] }
  0x1c   : > { %v337_v19 = vsel %vm323_vm2, %v306_v14, 0  ;;  %v5658_v23 = vand.u32 4294901760, %v334_v18  ;;  %v340_v29 = vsel %vm323_vm2, %v307_v24, 0  ;;  %v343_v38 = vsel %vm323_vm2, %v308_v34, 0  ;;  %v310_v50 = vld [vmem:[%s5630_s18 + $0x40] sm:$0xff]  ;;  %v311_v57 = vld [vmem:[%s5630_s18 + $0x48] sm:$0xff] }
  0x1d   : > { %v5650_v20 = vsub.f32 %v325_v9, %v5641_v15  ;;  %v5653_v21 = vsub.f32 %v328_v11, %v5643_v16  ;;  %v5656_v22 = vsub.f32 %v331_v12, %v5645_v17  ;;  %v5664_v28 = vand.u32 4294901760, %v337_v19  ;;  %v312_v0 = vld [vmem:[%s5630_s18 + $0x50] sm:$0xff]  ;;  %v314_v24 = vld [vmem:[%s5630_s18 + $0x60] sm:$0xff]  ;;  %v5772_v34 = vld [vmem:[%s7034_s3 + $0x8] sm:$0xff] }
  0x1e   : > { %v5671_v33 = vsub.f32 %v334_v18, %v5658_v23  ;;  %v5677_v37 = vand.u32 4294901760, %v340_v29  ;;  %v5691_v44 = vand.u32 4294901760, %v343_v38  ;;  %v346_v45 = vsel %vm323_vm2, %v309_v43, 0 }
  0x1f   : > { %v435_v26 = vand.u32 4294901760, %v5650_v20  ;;  %v445_v27 = vand.u32 4294901760, %v5653_v21  ;;  %v455_v32 = vand.u32 4294901760, %v5656_v22  ;;  %v5683_v42 = vsub.f32 %v337_v19, %v5664_v28 }
  0x20   : > { %v465_v41 = vand.u32 4294901760, %v5671_v33  ;;  %v5697_v49 = vsub.f32 %v340_v29, %v5677_v37  ;;  %v5705_v51 = vsub.f32 %v343_v38, %v5691_v44  ;;  %v5707_v52 = vand.u32 4294901760, %v346_v45 }
  0x21   : > { %4172 = vmatmul.mubr.f32.vlgmr.msra.gmra.mrb[0].mxu0 %v435_v26  ;;  %v436_v30 = vsub.f32 %v5650_v20, %v435_v26  ;;  %v446_v31 = vsub.f32 %v5653_v21, %v445_v27  ;;  %v456_v40 = vsub.f32 %v5656_v22, %v455_v32  ;;  %v475_v48 = vand.u32 4294901760, %v5683_v42 }
  0x22   : > { %4174 = vmatprep.mubr.msk.f32.mxu0 %vm5530_vm1, %v5529_v2  ;;  %4211 = vmatpush3.msra.mxu0 %v566_v10  ;;  %v466_v47 = vsub.f32 %v5671_v33, %v465_v41  ;;  %v485_v55 = vand.u32 4294901760, %v5697_v49  ;;  %v349_v56 = vsel %vm323_vm2, %v310_v50, 0  ;;  %v495_v58 = vand.u32 4294901760, %v5705_v51  ;;  %v313_v10 = vld [vmem:[%s5630_s18 + $0x58] sm:$0xff] }
  0x23   : > { %v437_v36 = vand.u32 4294901760, %v436_v30  ;;  %4251 = vmatprep.subr.mxu0 %v5529_v2  ;;  %v447_v39 = vand.u32 4294901760, %v446_v31  ;;  %v457_v46 = vand.u32 4294901760, %v456_v40  ;;  %v476_v54 = vsub.f32 %v5683_v42, %v475_v48 }
  0x24   : > { %v467_v53 = vand.u32 4294901760, %v466_v47  ;;  %v5719_v59 = vsub.f32 %v346_v45, %v5707_v52  ;;  %v486_v61 = vsub.f32 %v5697_v49, %v485_v55  ;;  %v5722_v62 = vand.u32 4294901760, %v349_v56 }
  0x25   : > { %4049 = vmatmul.mubr.f32.vlgmr.msra.gmra.mrb[0].mxu1 %v437_v36  ;;  %4175 = vmatmul.mubr.f32.gmra.mrb[2].mxu0 %v445_v27  ;;  %v477_v60 = vand.u32 4294901760, %v476_v54  ;;  %v352_v63 = vsel %vm323_vm2, %v311_v57, 0  ;;  %v496_v1 = vsub.f32 %v5705_v51, %v495_v58  ;;  %v355_v9 = vsel %vm323_vm2, %v312_v0, 0 }
  0x26   : > { %4088 = vmatpush3.msra.mxu1 %v568_v35  ;;  %4051 = vmatprep.mubr.msk.f32.mxu1 %vm5530_vm1, %v5529_v2  ;;  %v505_v3 = vand.u32 4294901760, %v5719_v59  ;;  %v487_v6 = vand.u32 4294901760, %v486_v61  ;;  %v5733_v7 = vsub.f32 %v349_v56, %v5722_v62  ;;  %v5735_v8 = vand.u32 4294901760, %v352_v63  ;;  %v5777_v35 = vld [vmem:[%s7034_s3 + $0x10] sm:$0xff] }
  0x27   : > { %4177 = vmatprep.mubr.msk.f32.mxu0 %vm5530_vm1, %v5529_v2  ;;  %4128 = vmatprep.subr.mxu1 %v5529_v2  ;;  %v497_v11 = vand.u32 4294901760, %v496_v1  ;;  %v5748_v18 = vand.u32 4294901760, %v355_v9  ;;  %v358_v19 = vsel %vm323_vm2, %v313_v10, 0  ;;  %v361_v26 = vsel %vm323_vm2, %v314_v24, 0 }
  0x28   : > { %v506_v12 = vsub.f32 %v5719_v59, %v505_v3  ;;  %v515_v13 = vand.u32 4294901760, %v5733_v7  ;;  %v5746_v14 = vsub.f32 %v352_v63, %v5735_v8  ;;  %v5756_v25 = vand.u32 4294901760, %v358_v19 }
  0x29   : > { %4052 = vmatmul.mubr.f32.gmra.mrb[2].mxu1 %v447_v39  ;;  %4178 = vmatmul.mubr.f32.gmra.mrb[4].mxu0 %v455_v32  ;;  %v5762_v31 = vsub.f32 %v355_v9, %v5748_v18  ;;  %v5767_v32 = vld [vmem:[%s7034_s3] sm:$0xff]  ;;  %v1397_v38 = vand.u32 4294901760, %v5772_v34  ;;  %v5788_v39 = vld [vmem:[%s7034_s3 + $0x18] sm:$0xff]  ;;  %v1400_v40 = vand.u32 4294901760, %v5777_v35  ;;  %v5531_v9 = vmov 0.0|0.0  }
  0x2a   : > { %4054 = vmatprep.mubr.msk.f32.mxu1 %vm5530_vm1, %v5529_v2  ;;  %4180 = vmatprep.mubr.msk.f32.mxu0 %vm5530_vm1, %v5529_v2  ;;  %v507_v27 = vand.u32 4294901760, %v506_v12  ;;  %v516_v29 = vsub.f32 %v5733_v7, %v515_v13  ;;  %v525_v30 = vand.u32 4294901760, %v5746_v14  ;;  %v1394_v36 = vand.u32 4294901760, %v5767_v32 }
  0x2b   : > { %v1403_v43 = vand.u32 4294901760, %v5788_v39  ;;  %v5795_v45 = vsub.f32 %v358_v19, %v5756_v25  ;;  %v5805_v47 = vsub.f32 %v5772_v34, %v1397_v38  ;;  %v535_v54 = vand.u32 4294901760, %v5762_v31 }
  0x2c   : > { %v517_v50 = vand.u32 4294901760, %v516_v29 }
  0x2d   : > { %4055 = vmatmul.mubr.f32.gmra.mrb[4].mxu1 %v457_v46  ;;  %4181 = vmatmul.mubr.f32.gmra.mrb[6].mxu0 %v465_v41  ;;  %v5791_v41 = vand.u32 4294901760, %v361_v26  ;;  %v5800_v46 = vsub.f32 %v5767_v32, %v1394_v36  ;;  %v536_v57 = vsub.f32 %v5762_v31, %v535_v54 }
  0x2e   : > { %4057 = vmatprep.mubr.msk.f32.mxu1 %vm5530_vm1, %v5529_v2  ;;  %4183 = vmatprep.mubr.msk.f32.mxu0 %vm5530_vm1, %v5529_v2 }
  0x2f   : > { %v537_v61 = vand.u32 4294901760, %v536_v57 }
  0x31   : > { %4058 = vmatmul.mubr.f32.gmra.mrb[6].mxu1 %v467_v53  ;;  %4184 = vmatmul.mubr.f32.gmra.mrb[8].mxu0 %v475_v48  ;;  %v5810_v48 = vsub.f32 %v5777_v35, %v1400_v40  ;;  %v526_v53 = vsub.f32 %v5746_v14, %v525_v30 }
  0x32   : > { %4060 = vmatprep.mubr.msk.f32.mxu1 %vm5530_vm1, %v5529_v2  ;;  %4186 = vmatprep.mubr.msk.f32.mxu0 %vm5530_vm1, %v5529_v2 }
  0x33   : > { %v527_v56 = vand.u32 4294901760, %v526_v53 }
  0x35   : > { %4061 = vmatmul.mubr.f32.gmra.mrb[8].mxu1 %v477_v60  ;;  %4187 = vmatmul.mubr.f32.gmra.mrb[10].mxu0 %v485_v55  ;;  %v5817_v55 = vsub.f32 %v5788_v39, %v1403_v43  ;;  %v5826_v60 = vsub.f32 %v361_v26, %v5791_v41 }
  0x36   : > { %4063 = vmatprep.mubr.msk.f32.mxu1 %vm5530_vm1, %v5529_v2  ;;  %4189 = vmatprep.mubr.msk.f32.mxu0 %vm5530_vm1, %v5529_v2 }
  0x37   : > { %v555_v0 = vand.u32 4294901760, %v5826_v60 }
  0x39   : > { %4064 = vmatmul.mubr.f32.gmra.mrb[10].mxu1 %v487_v6  ;;  %4190 = vmatmul.mubr.f32.gmra.mrb[12].mxu0 %v495_v58  ;;  %v545_v58 = vand.u32 4294901760, %v5795_v45 }
  0x3a   : > { %4066 = vmatprep.mubr.msk.f32.mxu1 %vm5530_vm1, %v5529_v2  ;;  %4192 = vmatprep.mubr.msk.f32.mxu0 %vm5530_vm1, %v5529_v2 }
  0x3b   : > { %v546_v63 = vsub.f32 %v5795_v45, %v545_v58 }
  0x3d   : > { %4067 = vmatmul.mubr.f32.gmra.mrb[12].mxu1 %v497_v11  ;;  %4193 = vmatmul.mubr.f32.gmra.mrb[14].mxu0 %v505_v3  ;;  %v547_v1 = vand.u32 4294901760, %v546_v63  ;;  %v556_v3 = vsub.f32 %v5826_v60, %v555_v0 }
  0x3e   : > { %4069 = vmatprep.mubr.msk.f32.mxu1 %vm5530_vm1, %v5529_v2  ;;  %4195 = vmatprep.mubr.msk.f32.mxu0 %vm5530_vm1, %v5529_v2 }
  0x3f   : > { %v557_v6 = vand.u32 4294901760, %v556_v3 }
  0x41   : > { %4070 = vmatmul.mubr.f32.gmra.mrb[14].mxu1 %v507_v27  ;;  %4196 = vmatmul.mubr.f32.gmra.mrb[16].mxu0 %v515_v13 }
  0x42   : > { %4072 = vmatprep.mubr.msk.f32.mxu1 %vm5530_vm1, %v5529_v2  ;;  %4198 = vmatprep.mubr.msk.f32.mxu0 %vm5530_vm1, %v5529_v2 }
  0x45   : > { %4073 = vmatmul.mubr.f32.gmra.mrb[16].mxu1 %v517_v50  ;;  %4199 = vmatmul.mubr.f32.gmra.mrb[18].mxu0 %v525_v30 }
  0x46   : > { %4075 = vmatprep.mubr.msk.f32.mxu1 %vm5530_vm1, %v5529_v2  ;;  %4201 = vmatprep.mubr.msk.f32.mxu0 %vm5530_vm1, %v5529_v2 }
  0x49   : > { %4076 = vmatmul.mubr.f32.gmra.mrb[18].mxu1 %v527_v56  ;;  %4202 = vmatmul.mubr.f32.gmra.mrb[20].mxu0 %v535_v54 }
  0x4a   : > { %4078 = vmatprep.mubr.msk.f32.mxu1 %vm5530_vm1, %v5529_v2  ;;  %4204 = vmatprep.mubr.msk.f32.mxu0 %vm5530_vm1, %v5529_v2 }
  0x4d   : > { %4079 = vmatmul.mubr.f32.gmra.mrb[20].mxu1 %v537_v61  ;;  %4205 = vmatmul.mubr.f32.gmra.mrb[22].mxu0 %v545_v58 }
  0x4e   : > { %4081 = vmatprep.mubr.msk.f32.mxu1 %vm5530_vm1, %v5529_v2  ;;  %4207 = vmatprep.mubr.msk.f32.mxu0 %vm5530_vm1, %v5529_v2 }
  0x51   : > { %4082 = vmatmul.mubr.f32.gmra.mrb[22].mxu1 %v547_v1  ;;  %4208 = vmatmul.mubr.f32.gmra.mrb[24].mxu0 %v555_v0 }
  0x52   : > { %4084 = vmatprep.mubr.msk.f32.mxu1 %vm5530_vm1, %v5529_v2  ;;  %4212 = vmatprep.mubr.msk.f32.mxu0 %vm5530_vm1, %v5529_v2 }
  0x55   : > { %4085 = vmatmul.mubr.f32.gmra.mrb[24].mxu1 %v557_v6  ;;  %4213 = vmatmul.mubr.f32.vlgmr.msra.gmra.mrb[0].mxu0 %v5641_v15 }
  0x56   : > { %4089 = vmatprep.mubr.msk.f32.mxu1 %vm5530_vm1, %v5529_v2  ;;  %4215 = vmatprep.mubr.msk.f32.mxu0 %vm5530_vm1, %v5529_v2 }
  0x57   : > { %4252 = vmatpush3.msra.mxu0 %v5613_v4  ;;  %v5938_v4 = vpack.c.bf16 %v1397_v38, %v1394_v36 }
  0x58   : > { %4892 = vmatprep.subr.bf16.mxu0 %v5531_v9 }
  0x59   : > { %4090 = vmatmul.mubr.f32.vlgmr.msra.gmra.mrb[0].mxu1 %v5641_v15  ;;  %4216 = vmatmul.mubr.f32.gmra.mrb[2].mxu0 %v5643_v16 }
  0x5a   : > { %4129 = vmatpush3.msra.mxu1 %v5623_v5  ;;  %4092 = vmatprep.mubr.msk.f32.mxu1 %vm5530_vm1, %v5529_v2  ;;  %v5951_v5 = vpack.c.bf16 %v1403_v43, %v1400_v40 }
  0x5b   : > { %4218 = vmatprep.mubr.msk.f32.mxu0 %vm5530_vm1, %v5529_v2  ;;  %4856 = vmatprep.subr.bf16.mxu1 %v5531_v9 }
  0x5d   : > { %4093 = vmatmul.mubr.f32.gmra.mrb[2].mxu1 %v5643_v16  ;;  %4219 = vmatmul.mubr.f32.gmra.mrb[4].mxu0 %v5645_v17 }
  0x5e   : > { %4095 = vmatprep.mubr.msk.f32.mxu1 %vm5530_vm1, %v5529_v2  ;;  %4221 = vmatprep.mubr.msk.f32.mxu0 %vm5530_vm1, %v5529_v2 }
  0x61   : > { %4096 = vmatmul.mubr.f32.gmra.mrb[4].mxu1 %v5645_v17  ;;  %4222 = vmatmul.mubr.f32.gmra.mrb[6].mxu0 %v5658_v23 }
  0x62   : > { %4098 = vmatprep.mubr.msk.f32.mxu1 %vm5530_vm1, %v5529_v2  ;;  %4224 = vmatprep.mubr.msk.f32.mxu0 %vm5530_vm1, %v5529_v2 }
  0x65   : > { %4099 = vmatmul.mubr.f32.gmra.mrb[6].mxu1 %v5658_v23  ;;  %4225 = vmatmul.mubr.f32.gmra.mrb[8].mxu0 %v5664_v28 }
  0x66   : > { %4101 = vmatprep.mubr.msk.f32.mxu1 %vm5530_vm1, %v5529_v2  ;;  %4227 = vmatprep.mubr.msk.f32.mxu0 %vm5530_vm1, %v5529_v2 }
  0x69   : > { %4102 = vmatmul.mubr.f32.gmra.mrb[8].mxu1 %v5664_v28  ;;  %4228 = vmatmul.mubr.f32.gmra.mrb[10].mxu0 %v5677_v37 }
  0x6a   : > { %4104 = vmatprep.mubr.msk.f32.mxu1 %vm5530_vm1, %v5529_v2  ;;  %4230 = vmatprep.mubr.msk.f32.mxu0 %vm5530_vm1, %v5529_v2 }
  0x6d   : > { %4105 = vmatmul.mubr.f32.gmra.mrb[10].mxu1 %v5677_v37  ;;  %4231 = vmatmul.mubr.f32.gmra.mrb[12].mxu0 %v5691_v44 }
  0x6e   : > { %4107 = vmatprep.mubr.msk.f32.mxu1 %vm5530_vm1, %v5529_v2  ;;  %4233 = vmatprep.mubr.msk.f32.mxu0 %vm5530_vm1, %v5529_v2 }
  0x71   : > { %4108 = vmatmul.mubr.f32.gmra.mrb[12].mxu1 %v5691_v44  ;;  %4234 = vmatmul.mubr.f32.gmra.mrb[14].mxu0 %v5707_v52 }
  0x72   : > { %4110 = vmatprep.mubr.msk.f32.mxu1 %vm5530_vm1, %v5529_v2  ;;  %4236 = vmatprep.mubr.msk.f32.mxu0 %vm5530_vm1, %v5529_v2 }
  0x75   : > { %4111 = vmatmul.mubr.f32.gmra.mrb[14].mxu1 %v5707_v52  ;;  %4237 = vmatmul.mubr.f32.gmra.mrb[16].mxu0 %v5722_v62 }
  0x76   : > { %4113 = vmatprep.mubr.msk.f32.mxu1 %vm5530_vm1, %v5529_v2  ;;  %4239 = vmatprep.mubr.msk.f32.mxu0 %vm5530_vm1, %v5529_v2 }
  0x79   : > { %4114 = vmatmul.mubr.f32.gmra.mrb[16].mxu1 %v5722_v62  ;;  %4240 = vmatmul.mubr.f32.gmra.mrb[18].mxu0 %v5735_v8 }
  0x7a   : > { %4116 = vmatprep.mubr.msk.f32.mxu1 %vm5530_vm1, %v5529_v2  ;;  %4242 = vmatprep.mubr.msk.f32.mxu0 %vm5530_vm1, %v5529_v2 }
  0x7d   : > { %4117 = vmatmul.mubr.f32.gmra.mrb[18].mxu1 %v5735_v8  ;;  %4243 = vmatmul.mubr.f32.gmra.mrb[20].mxu0 %v5748_v18 }
  0x7e   : > { %4119 = vmatprep.mubr.msk.f32.mxu1 %vm5530_vm1, %v5529_v2  ;;  %4245 = vmatprep.mubr.msk.f32.mxu0 %vm5530_vm1, %v5529_v2 }
  0x81   : > { %4120 = vmatmul.mubr.f32.gmra.mrb[20].mxu1 %v5748_v18  ;;  %4246 = vmatmul.mubr.f32.gmra.mrb[22].mxu0 %v5756_v25 }
  0x82   : > { %4122 = vmatprep.mubr.msk.f32.mxu1 %vm5530_vm1, %v5529_v2  ;;  %4248 = vmatprep.mubr.msk.f32.mxu0 %vm5530_vm1, %v5529_v2 }
  0x85   : > { %4123 = vmatmul.mubr.f32.gmra.mrb[22].mxu1 %v5756_v25  ;;  %4249 = vmatmul.mubr.f32.gmra.mrb[24].mxu0 %v5791_v41 }
  0x86   : > { %4125 = vmatprep.mubr.msk.f32.mxu1 %vm5530_vm1, %v5529_v2  ;;  %4253 = vmatprep.mubr.msk.f32.mxu0 %vm5530_vm1, %v5529_v2 }
  0x89   : > { %4126 = vmatmul.mubr.f32.gmra.mrb[24].mxu1 %v5791_v41  ;;  %4254 = vmatmul.mubr.f32.vlgmr.msra.gmra.mrb[0].mxu0 %v5641_v15  ;;  %v1595_v15 = vand.u32 4294901760, %v5800_v46 }
  0x8a   : > { %4130 = vmatprep.mubr.msk.f32.mxu1 %vm5530_vm1, %v5529_v2  ;;  %4256 = vmatprep.mubr.msk.f32.mxu0 %vm5530_vm1, %v5529_v2 }
  0x8d   : > { %4131 = vmatmul.mubr.f32.vlgmr.msra.gmra.mrb[0].mxu1 %v5650_v20  ;;  %4257 = vmatmul.mubr.f32.gmra.mrb[2].mxu0 %v5643_v16  ;;  %v1602_v16 = vand.u32 4294901760, %v5805_v47 }
  0x8e   : > { %4133 = vmatprep.mubr.msk.f32.mxu1 %vm5530_vm1, %v5529_v2  ;;  %4259 = vmatprep.mubr.msk.f32.mxu0 %vm5530_vm1, %v5529_v2 }
  0x8f   : > { %4858 = vmatpush3.bf16.msra.mxu1 %v5938_v4  ;;  %v1603_v20 = vsub.f32 %v5805_v47, %v1602_v16 }
  0x90   : > { %4859 = vmatprep.subr.bf16.mxu1 %v5531_v9 }
  0x91   : > { %4134 = vmatmul.mubr.f32.gmra.mrb[2].mxu1 %v5653_v21  ;;  %4260 = vmatmul.mubr.f32.gmra.mrb[4].mxu0 %v5645_v17  ;;  %v1596_v17 = vsub.f32 %v5800_v46, %v1595_v15 }
  0x92   : > { %4136 = vmatprep.mubr.msk.f32.mxu1 %vm5530_vm1, %v5529_v2  ;;  %4262 = vmatprep.mubr.msk.f32.mxu0 %vm5530_vm1, %v5529_v2 }
  0x93   : > { %4861 = vmatpush3.bf16.msra.mxu1 %v5951_v5  ;;  %v1597_v21 = vand.u32 4294901760, %v1596_v17 }
  0x94   : > { %4862 = vmatprep.subr.bf16.mxu1 %v5531_v9 }
  0x95   : > { %4137 = vmatmul.mubr.f32.gmra.mrb[4].mxu1 %v5656_v22  ;;  %4263 = vmatmul.mubr.f32.gmra.mrb[6].mxu0 %v5658_v23  ;;  %v1604_v22 = vand.u32 4294901760, %v1603_v20 }
  0x96   : > { %4139 = vmatprep.mubr.msk.f32.mxu1 %vm5530_vm1, %v5529_v2  ;;  %4265 = vmatprep.mubr.msk.f32.mxu0 %vm5530_vm1, %v5529_v2 }
  0x97   : > { %v6033_v23 = vpack.c.bf16 %v1604_v22, %v1597_v21 }
  0x99   : > { %4140 = vmatmul.mubr.f32.gmra.mrb[6].mxu1 %v5671_v33  ;;  %4266 = vmatmul.mubr.f32.gmra.mrb[8].mxu0 %v5664_v28  ;;  %v1609_v28 = vand.u32 4294901760, %v5810_v48  ;;  %v1616_v33 = vand.u32 4294901760, %v5817_v55 }
  0x9a   : > { %4142 = vmatprep.mubr.msk.f32.mxu1 %vm5530_vm1, %v5529_v2  ;;  %4268 = vmatprep.mubr.msk.f32.mxu0 %vm5530_vm1, %v5529_v2 }
  0x9d   : > { %4143 = vmatmul.mubr.f32.gmra.mrb[8].mxu1 %v5683_v42  ;;  %4269 = vmatmul.mubr.f32.gmra.mrb[10].mxu0 %v5677_v37  ;;  %v1610_v37 = vsub.f32 %v5810_v48, %v1609_v28  ;;  %v1617_v42 = vsub.f32 %v5817_v55, %v1616_v33 }
  0x9e   : > { %4145 = vmatprep.mubr.msk.f32.mxu1 %vm5530_vm1, %v5529_v2  ;;  %4271 = vmatprep.mubr.msk.f32.mxu0 %vm5530_vm1, %v5529_v2 }
  0xa1   : > { %4146 = vmatmul.mubr.f32.gmra.mrb[10].mxu1 %v5697_v49  ;;  %4272 = vmatmul.mubr.f32.gmra.mrb[12].mxu0 %v5691_v44  ;;  %v1611_v44 = vand.u32 4294901760, %v1610_v37  ;;  %v1618_v49 = vand.u32 4294901760, %v1617_v42 }
  0xa2   : > { %4148 = vmatprep.mubr.msk.f32.mxu1 %vm5530_vm1, %v5529_v2  ;;  %4274 = vmatprep.mubr.msk.f32.mxu0 %vm5530_vm1, %v5529_v2 }
  0xa5   : > { %4149 = vmatmul.mubr.f32.gmra.mrb[12].mxu1 %v5705_v51  ;;  %4275 = vmatmul.mubr.f32.gmra.mrb[14].mxu0 %v5707_v52  ;;  %v6043_v51 = vpack.c.bf16 %v1618_v49, %v1611_v44  ;;  %v4869_v52 = vpack.c.bf16 %v5805_v47, %v5800_v46  ;;  %v2407_v46 = vld [vmem:[%s7036_s5] sm:$0xff]  ;;  %v2408_v47 = vld [vmem:[%s7036_s5 + $0x8] sm:$0xff] }
  0xa6   : > { %4151 = vmatprep.mubr.msk.f32.mxu1 %vm5530_vm1, %v5529_v2  ;;  %4277 = vmatprep.mubr.msk.f32.mxu0 %vm5530_vm1, %v5529_v2 }
  0xa9   : > { %4152 = vmatmul.mubr.f32.gmra.mrb[14].mxu1 %v5719_v59  ;;  %4278 = vmatmul.mubr.f32.gmra.mrb[16].mxu0 %v5722_v62  ;;  %v4872_v59 = vpack.c.bf16 %v5817_v55, %v5810_v48  ;;  %v2409_v48 = vld [vmem:[%s7036_s5 + $0x10] sm:$0xff]  ;;  %v2458_v55 = vand.u32 4294901760, %v2407_v46 }
  0xaa   : > { %4154 = vmatprep.mubr.msk.f32.mxu1 %vm5530_vm1, %v5529_v2  ;;  %4280 = vmatprep.mubr.msk.f32.mxu0 %vm5530_vm1, %v5529_v2 }
  0xad   : > { %4155 = vmatmul.mubr.f32.gmra.mrb[16].mxu1 %v5733_v7  ;;  %4281 = vmatmul.mubr.f32.gmra.mrb[18].mxu0 %v5735_v8  ;;  %v6052_v8 = vld [vmem:[%s7033_s2] ss:$0 sm:$0xff] }
  0xae   : > { %4157 = vmatprep.mubr.msk.f32.mxu1 %vm5530_vm1, %v5529_v2  ;;  %4283 = vmatprep.mubr.msk.f32.mxu0 %vm5530_vm1, %v5529_v2 }
  0xb1   : > { %4158 = vmatmul.mubr.f32.gmra.mrb[18].mxu1 %v5746_v14  ;;  %4284 = vmatmul.mubr.f32.gmra.mrb[20].mxu0 %v5748_v18 }
  0xb2   : > { %4160 = vmatprep.mubr.msk.f32.mxu1 %vm5530_vm1, %v5529_v2  ;;  %4286 = vmatprep.mubr.msk.f32.mxu0 %vm5530_vm1, %v5529_v2 }
  0xb5   : > { %4161 = vmatmul.mubr.f32.gmra.mrb[20].mxu1 %v5762_v31  ;;  %4287 = vmatmul.mubr.f32.gmra.mrb[22].mxu0 %v5756_v25 }
  0xb6   : > { %4163 = vmatprep.mubr.msk.f32.mxu1 %vm5530_vm1, %v5529_v2  ;;  %4289 = vmatprep.mubr.msk.f32.mxu0 %vm5530_vm1, %v5529_v2 }
  0xb9   : > { %4164 = vmatmul.mubr.f32.gmra.mrb[22].mxu1 %v5795_v45  ;;  %4290 = vmatmul.mubr.f32.gmra.mrb[24].mxu0 %v5791_v41 }
  0xba   : > { %4166 = vmatprep.mubr.msk.f32.mxu1 %vm5530_vm1, %v5529_v2  ;;  %4582 = vmatprep.mubr.msk.f32.mxu0 %vm5530_vm1, %v5529_v2 }
  0xbd   : > { %4167 = vmatmul.mubr.f32.gmra.mrb[24].mxu1 %v5826_v60 }
  0xbe   : > { %4300 = vmatprep.mubr.msk.f32.mxu1 %vm5530_vm1, %v5529_v2 }
 0x15c   : > { %v1253_v62 = vpop.f32.mrb[0].mxu0 }
 0x15d   : > { %v4255_v7 = vpop.f32.mrb[1].mxu0 }
 0x160   : > { %v781_v10 = vpop.f32.mrb[0].mxu1  ;;  %v1259_v11 = vpop.f32.mrb[2].mxu0 }
 0x161   : > { %v4928_v12 = vadd.f32 %v6052_v8, %v781_v10  ;;  %v4132_v13 = vpop.f32.mrb[1].mxu1  ;;  %v4258_v14 = vpop.f32.mrb[3].mxu0 }
 0x163   : > { %v4929_v18 = vadd.f32 %v4928_v12, %v1253_v62 }
 0x164   : > { %v788_v19 = vpop.f32.mrb[2].mxu1  ;;  %v1265_v24 = vpop.f32.mrb[4].mxu0 }
 0x165   : > { %v1329_v25 = vmax.f32 %v4929_v18, 0.0  ;;  %v4930_v26 = vadd.f32 %v6052_v8, %v788_v19  ;;  %v4135_v27 = vpop.f32.mrb[3].mxu1  ;;  %v4261_v29 = vpop.f32.mrb[5].mxu0 }
 0x167   : > { %v1355_v30 = vsel %vm1353_vm3, %v1329_v25, 0  ;;  %v4931_v31 = vadd.f32 %v4930_v26, %v1259_v11 }
 0x168   : > { %v6057_v32 = vand.u32 4294901760, %v1355_v30  ;;  %v795_v34 = vpop.f32.mrb[4].mxu1  ;;  %v1271_v35 = vpop.f32.mrb[6].mxu0 }
 0x169   : > { %v1330_v36 = vmax.f32 %v4931_v31, 0.0  ;;  %v4932_v38 = vadd.f32 %v6052_v8, %v795_v34  ;;  %v4138_v39 = vpop.f32.mrb[5].mxu1  ;;  %v4264_v40 = vpop.f32.mrb[7].mxu0 }
 0x16a   : > { %v6061_v41 = vsub.f32 %v1355_v30, %v6057_v32 }
 0x16b   : > { %v1358_v43 = vsel %vm1353_vm3, %v1330_v36, 0  ;;  %v4933_v45 = vadd.f32 %v4932_v38, %v1265_v24 }
 0x16c   : > { %v1464_v50 = vand.u32 4294901760, %v6061_v41  ;;  %v6065_v53 = vand.u32 4294901760, %v1358_v43  ;;  %v802_v54 = vpop.f32.mrb[6].mxu1  ;;  %v1277_v56 = vpop.f32.mrb[8].mxu0 }
 0x16d   : > { %v1331_v57 = vmax.f32 %v4933_v45, 0.0  ;;  %v4934_v58 = vadd.f32 %v6052_v8, %v802_v54  ;;  %v4141_v60 = vpop.f32.mrb[7].mxu1  ;;  %v4267_v61 = vpop.f32.mrb[9].mxu0 }
 0x16e   : > { %v1465_v63 = vsub.f32 %v6061_v41, %v1464_v50  ;;  %v6072_v0 = vsub.f32 %v1358_v43, %v6065_v53 }
 0x16f   : > { %v1361_v1 = vsel %vm1353_vm3, %v1331_v57, 0  ;;  %v4935_v3 = vadd.f32 %v4934_v58, %v1271_v35 }
 0x170   : > { %v1466_v6 = vand.u32 4294901760, %v1465_v63  ;;  %v6075_v17 = vand.u32 4294901760, %v1361_v1  ;;  %v809_v20 = vpop.f32.mrb[8].mxu1  ;;  %v1283_v21 = vpop.f32.mrb[10].mxu0  ;;  %v1474_v22 = vand.u32 4294901760, %v6072_v0 }
 0x171   : > { %v1332_v37 = vmax.f32 %v4935_v3, 0.0  ;;  %v4936_v42 = vadd.f32 %v6052_v8, %v809_v20  ;;  %v4144_v44 = vpop.f32.mrb[9].mxu1  ;;  %v4270_v49 = vpop.f32.mrb[11].mxu0 }
 0x172   : > { %v6080_v62 = vsub.f32 %v1361_v1, %v6075_v17  ;;  %4301 = vmatmul.mubr.f32.vlgmr.msra.gmra.mrb[26].mxu1 %v1466_v6  ;;  %v1475_v7 = vsub.f32 %v6072_v0, %v1474_v22 }
 0x173   : > { %v1364_v10 = vsel %vm1353_vm3, %v1332_v37, 0  ;;  %v4937_v11 = vadd.f32 %v4936_v42, %v1277_v56  ;;  %4864 = vmatpush3.bf16.msra.mxu1 %v6033_v23  ;;  %4303 = vmatprep.mubr.msk.f32.mxu1 %vm5530_vm1, %v5529_v2 }
 0x174   : > { %v6089_v12 = vand.u32 4294901760, %v1364_v10  ;;  %v816_v13 = vpop.f32.mrb[10].mxu1  ;;  %v1289_v14 = vpop.f32.mrb[12].mxu0  ;;  %v1476_v18 = vand.u32 4294901760, %v1475_v7  ;;  %v1484_v19 = vand.u32 4294901760, %v6080_v62  ;;  %4865 = vmatprep.subr.bf16.mxu1 %v5531_v9 }
 0x175   : > { %v1333_v24 = vmax.f32 %v4937_v11, 0.0  ;;  %v4938_v25 = vadd.f32 %v6052_v8, %v816_v13  ;;  %v4147_v26 = vpop.f32.mrb[11].mxu1  ;;  %v4273_v27 = vpop.f32.mrb[13].mxu0 }
 0x176   : > { %v6095_v29 = vsub.f32 %v1364_v10, %v6089_v12  ;;  %4304 = vmatmul.mubr.f32.gmra.mrb[28].mxu1 %v1476_v18  ;;  %v1485_v23 = vsub.f32 %v6080_v62, %v1484_v19 }
 0x177   : > { %v1367_v30 = vsel %vm1353_vm3, %v1333_v24, 0  ;;  %v4939_v31 = vadd.f32 %v4938_v25, %v1283_v21  ;;  %4306 = vmatprep.mubr.msk.f32.mxu1 %vm5530_vm1, %v5529_v2  ;;  %4867 = vmatpush3.bf16.msra.mxu1 %v6043_v51 }
 0x178   : > { %v6104_v34 = vand.u32 4294901760, %v1367_v30  ;;  %v823_v35 = vpop.f32.mrb[12].mxu1  ;;  %v1295_v36 = vpop.f32.mrb[14].mxu0  ;;  %v1486_v38 = vand.u32 4294901760, %v1485_v23  ;;  %v1494_v39 = vand.u32 4294901760, %v6095_v29  ;;  %4868 = vmatprep.subr.bf16.mxu1 %v5531_v9 }
 0x179   : > { %v1334_v40 = vmax.f32 %v4939_v31, 0.0  ;;  %v4940_v43 = vadd.f32 %v6052_v8, %v823_v35  ;;  %v4150_v45 = vpop.f32.mrb[13].mxu1  ;;  %v4276_v54 = vpop.f32.mrb[15].mxu0 }
 0x17a   : > { %v6110_v56 = vsub.f32 %v1367_v30, %v6104_v34  ;;  %4307 = vmatmul.mubr.f32.gmra.mrb[30].mxu1 %v1486_v38  ;;  %v1495_v51 = vsub.f32 %v6095_v29, %v1494_v39 }
 0x17b   : > { %v1370_v57 = vsel %vm1353_vm3, %v1334_v40, 0  ;;  %v4941_v58 = vadd.f32 %v4940_v43, %v1289_v14  ;;  %4309 = vmatprep.mubr.msk.f32.mxu1 %vm5530_vm1, %v5529_v2 }
 0x17c   : > { %v6118_v60 = vand.u32 4294901760, %v1370_v57  ;;  %v830_v61 = vpop.f32.mrb[14].mxu1  ;;  %v1301_v63 = vpop.f32.mrb[16].mxu0  ;;  %v1496_v1 = vand.u32 4294901760, %v1495_v51  ;;  %v1504_v3 = vand.u32 4294901760, %v6110_v56 }
 0x17d   : > { %v1335_v6 = vmax.f32 %v4941_v58, 0.0  ;;  %v4942_v20 = vadd.f32 %v6052_v8, %v830_v61  ;;  %v4153_v21 = vpop.f32.mrb[15].mxu1  ;;  %v4279_v37 = vpop.f32.mrb[17].mxu0 }
 0x17e   : > { %v6123_v42 = vsub.f32 %v1370_v57, %v6118_v60  ;;  %4310 = vmatmul.mubr.f32.gmra.mrb[32].mxu1 %v1496_v1  ;;  %v1505_v44 = vsub.f32 %v6110_v56, %v1504_v3 }
 0x17f   : > { %v1373_v49 = vsel %vm1353_vm3, %v1335_v6, 0  ;;  %v4943_v7 = vadd.f32 %v4942_v20, %v1295_v36  ;;  %4312 = vmatprep.mubr.msk.f32.mxu1 %vm5530_vm1, %v5529_v2 }
 0x180   : > { %v6131_v10 = vand.u32 4294901760, %v1373_v49  ;;  %v837_v11 = vpop.f32.mrb[16].mxu1  ;;  %v1307_v13 = vpop.f32.mrb[18].mxu0  ;;  %v1506_v14 = vand.u32 4294901760, %v1505_v44  ;;  %v1514_v18 = vand.u32 4294901760, %v6123_v42 }
 0x181   : > { %v1336_v24 = vmax.f32 %v4943_v7, 0.0  ;;  %v4944_v25 = vadd.f32 %v6052_v8, %v837_v11  ;;  %v4156_v26 = vpop.f32.mrb[17].mxu1  ;;  %v4282_v27 = vpop.f32.mrb[19].mxu0 }
 0x182   : > { %v6136_v23 = vsub.f32 %v1373_v49, %v6131_v10  ;;  %4313 = vmatmul.mubr.f32.gmra.mrb[34].mxu1 %v1506_v14  ;;  %v1515_v30 = vsub.f32 %v6123_v42, %v1514_v18 }
 0x183   : > { %v1376_v31 = vsel %vm1353_vm3, %v1336_v24, 0  ;;  %v4945_v35 = vadd.f32 %v4944_v25, %v1301_v63  ;;  %4315 = vmatprep.mubr.msk.f32.mxu1 %vm5530_vm1, %v5529_v2 }
 0x184   : > { %v6144_v36 = vand.u32 4294901760, %v1376_v31  ;;  %v844_v38 = vpop.f32.mrb[18].mxu1  ;;  %v1313_v40 = vpop.f32.mrb[20].mxu0  ;;  %v1516_v43 = vand.u32 4294901760, %v1515_v30  ;;  %v1524_v45 = vand.u32 4294901760, %v6136_v23 }
 0x185   : > { %v1337_v54 = vmax.f32 %v4945_v35, 0.0  ;;  %v4946_v51 = vadd.f32 %v6052_v8, %v844_v38  ;;  %v4159_v57 = vpop.f32.mrb[19].mxu1  ;;  %v4285_v58 = vpop.f32.mrb[21].mxu0 }
 0x186   : > { %v6149_v61 = vsub.f32 %v1376_v31, %v6144_v36  ;;  %4316 = vmatmul.mubr.f32.gmra.mrb[36].mxu1 %v1516_v43  ;;  %v1525_v63 = vsub.f32 %v6136_v23, %v1524_v45 }
 0x187   : > { %v1379_v1 = vsel %vm1353_vm3, %v1337_v54, 0  ;;  %v4947_v6 = vadd.f32 %v4946_v51, %v1307_v13  ;;  %4318 = vmatprep.mubr.msk.f32.mxu1 %vm5530_vm1, %v5529_v2 }
 0x188   : > { %v6157_v20 = vand.u32 4294901760, %v1379_v1  ;;  %v851_v21 = vpop.f32.mrb[20].mxu1  ;;  %v1319_v37 = vpop.f32.mrb[22].mxu0  ;;  %v1526_v44 = vand.u32 4294901760, %v1525_v63  ;;  %v1534_v49 = vand.u32 4294901760, %v6149_v61 }
 0x189   : > { %v1338_v7 = vmax.f32 %v4947_v6, 0.0  ;;  %v4948_v11 = vadd.f32 %v6052_v8, %v851_v21  ;;  %v4162_v14 = vpop.f32.mrb[21].mxu1  ;;  %v4288_v24 = vpop.f32.mrb[23].mxu0 }
 0x18a   : > { %v6162_v25 = vsub.f32 %v1379_v1, %v6157_v20  ;;  %4319 = vmatmul.mubr.f32.gmra.mrb[38].mxu1 %v1526_v44  ;;  %v1535_v13 = vsub.f32 %v6149_v61, %v1534_v49 }
 0x18b   : > { %v1382_v26 = vsel %vm1353_vm3, %v1338_v7, 0  ;;  %v4949_v27 = vadd.f32 %v4948_v11, %v1313_v40  ;;  %4321 = vmatprep.mubr.msk.f32.mxu1 %vm5530_vm1, %v5529_v2 }
 0x18c   : > { %v6170_v30 = vand.u32 4294901760, %v1382_v26  ;;  %v858_v31 = vpop.f32.mrb[22].mxu1  ;;  %v1325_v35 = vpop.f32.mrb[24].mxu0  ;;  %v1536_v38 = vand.u32 4294901760, %v1535_v13  ;;  %v1544_v43 = vand.u32 4294901760, %v6162_v25 }
 0x18d   : > { %v1339_v54 = vmax.f32 %v4949_v27, 0.0  ;;  %v4950_v51 = vadd.f32 %v6052_v8, %v858_v31  ;;  %v4165_v57 = vpop.f32.mrb[23].mxu1  ;;  %v4291_v58 = vpop.f32.mrb[25].mxu0 }
 0x18e   : > { %v6175_v63 = vsub.f32 %v1382_v26, %v6170_v30  ;;  %4322 = vmatmul.mubr.f32.gmra.mrb[40].mxu1 %v1536_v38  ;;  %v1545_v40 = vsub.f32 %v6162_v25, %v1544_v43 }
 0x18f   : > { %v1385_v1 = vsel %vm1353_vm3, %v1339_v54, 0  ;;  %v4951_v6 = vadd.f32 %v4950_v51, %v1319_v37  ;;  %4324 = vmatprep.mubr.msk.f32.mxu1 %vm5530_vm1, %v5529_v2 }
 0x190   : > { %v6183_v21 = vand.u32 4294901760, %v1385_v1  ;;  %v865_v44 = vpop.f32.mrb[24].mxu1  ;;  %v1546_v7 = vand.u32 4294901760, %v1545_v40  ;;  %v1554_v11 = vand.u32 4294901760, %v6175_v63 }
 0x191   : > { %v1340_v14 = vmax.f32 %v4951_v6, 0.0  ;;  %v4952_v24 = vadd.f32 %v6052_v8, %v865_v44  ;;  %v4168_v13 = vpop.f32.mrb[25].mxu1 }
 0x192   : > { %v6188_v26 = vsub.f32 %v1385_v1, %v6183_v21  ;;  %4325 = vmatmul.mubr.f32.gmra.mrb[42].mxu1 %v1546_v7  ;;  %v1555_v37 = vsub.f32 %v6175_v63, %v1554_v11 }
 0x193   : > { %v1388_v27 = vsel %vm1353_vm3, %v1340_v14, 0  ;;  %v4953_v31 = vadd.f32 %v4952_v24, %v1325_v35  ;;  %4327 = vmatprep.mubr.msk.f32.mxu1 %vm5530_vm1, %v5529_v2 }
 0x194   : > { %v6196_v38 = vand.u32 4294901760, %v1388_v27  ;;  %v1556_v54 = vand.u32 4294901760, %v1555_v37  ;;  %v1564_v8 = vand.u32 4294901760, %v6188_v26 }
 0x195   : > { %v1341_v51 = vmax.f32 %v4953_v31, 0.0 }
 0x196   : > { %v6200_v57 = vsub.f32 %v1388_v27, %v6196_v38  ;;  %4328 = vmatmul.mubr.f32.gmra.mrb[44].mxu1 %v1556_v54  ;;  %v1565_v58 = vsub.f32 %v6188_v26, %v1564_v8 }
 0x197   : > { %v1391_v40 = vsel %vm1353_vm3, %v1341_v51, 0  ;;  %4330 = vmatprep.mubr.msk.f32.mxu1 %vm5530_vm1, %v5529_v2 }
 0x198   : > { %v6208_v35 = vand.u32 4294901760, %v1391_v40  ;;  %v1566_v1 = vand.u32 4294901760, %v1565_v58  ;;  %v1574_v6 = vand.u32 4294901760, %v6200_v57 }
 0x19a   : > { %v6212_v44 = vsub.f32 %v1391_v40, %v6208_v35  ;;  %4331 = vmatmul.mubr.f32.gmra.mrb[46].mxu1 %v1566_v1  ;;  %v1575_v7 = vsub.f32 %v6200_v57, %v1574_v6 }
 0x19b   : > { %4333 = vmatprep.mubr.msk.f32.mxu1 %vm5530_vm1, %v5529_v2 }
 0x19c   : > { %v1576_v14 = vand.u32 4294901760, %v1575_v7  ;;  %v1584_v24 = vand.u32 4294901760, %v6212_v44 }
 0x19e   : > { %4334 = vmatmul.mubr.f32.gmra.mrb[48].mxu1 %v1576_v14  ;;  %v1585_v13 = vsub.f32 %v6212_v44, %v1584_v24 }
 0x19f   : > { %4336 = vmatprep.mubr.msk.f32.mxu1 %vm5530_vm1, %v5529_v2 }
 0x1a0   : > { %v1586_v37 = vand.u32 4294901760, %v1585_v13 }
 0x1a2   : > { %4337 = vmatmul.mubr.f32.gmra.mrb[50].mxu1 %v1586_v37 }
 0x1a3   : > { %4347 = vmatprep.mubr.msk.f32.mxu1 %vm5530_vm1, %v5529_v2 }
 0x1a6   : > { %4348 = vmatmul.mubr.f32.vlgmr.msra.gmra.mrb[26].mxu1 %v6057_v32 }
 0x1a7   : > { %4870 = vmatpush3.bf16.msra.mxu1 %v4869_v52  ;;  %4350 = vmatprep.mubr.msk.f32.mxu1 %vm5530_vm1, %v5529_v2  ;;  %v4881_v52 = vpack.c.bf16 %v1602_v16, %v1595_v15  ;;  %v2461_v15 = vand.u32 4294901760, %v2408_v47  ;;  %v2410_v16 = vld [vmem:[%s7036_s5 + $0x18] sm:$0xff] }
 0x1a8   : > { %4871 = vmatprep.subr.bf16.mxu1 %v5531_v9 }
 0x1aa   : > { %4351 = vmatmul.mubr.f32.gmra.mrb[28].mxu1 %v6065_v53 }
 0x1ab   : > { %4353 = vmatprep.mubr.msk.f32.mxu1 %vm5530_vm1, %v5529_v2  ;;  %4873 = vmatpush3.bf16.msra.mxu1 %v4872_v59  ;;  %v4884_v59 = vpack.c.bf16 %v1616_v33, %v1609_v28  ;;  %v2464_v28 = vand.u32 4294901760, %v2409_v48  ;;  %v2467_v33 = vand.u32 4294901760, %v2410_v16 }
 0x1ac   : > { %4874 = vmatprep.subr.bf16.mxu1 %v5531_v9 }
 0x1ae   : > { %4354 = vmatmul.mubr.f32.gmra.mrb[30].mxu1 %v6075_v17 }
 0x1af   : > { %4356 = vmatprep.mubr.msk.f32.mxu1 %vm5530_vm1, %v5529_v2 }
 0x1b2   : > { %4357 = vmatmul.mubr.f32.gmra.mrb[32].mxu1 %v6089_v12 }
 0x1b3   : > { %4359 = vmatprep.mubr.msk.f32.mxu1 %vm5530_vm1, %v5529_v2 }
 0x1b6   : > { %4360 = vmatmul.mubr.f32.gmra.mrb[34].mxu1 %v6104_v34 }
 0x1b7   : > { %4362 = vmatprep.mubr.msk.f32.mxu1 %vm5530_vm1, %v5529_v2 }
 0x1ba   : > { %4363 = vmatmul.mubr.f32.gmra.mrb[36].mxu1 %v6118_v60 }
 0x1bb   : > { %4365 = vmatprep.mubr.msk.f32.mxu1 %vm5530_vm1, %v5529_v2 }
 0x1be   : > { %4366 = vmatmul.mubr.f32.gmra.mrb[38].mxu1 %v6131_v10 }
 0x1bf   : > { %4368 = vmatprep.mubr.msk.f32.mxu1 %vm5530_vm1, %v5529_v2 }
 0x1c2   : > { %4369 = vmatmul.mubr.f32.gmra.mrb[40].mxu1 %v6144_v36 }
 0x1c3   : > { %4371 = vmatprep.mubr.msk.f32.mxu1 %vm5530_vm1, %v5529_v2 }
 0x1c6   : > { %4372 = vmatmul.mubr.f32.gmra.mrb[42].mxu1 %v6157_v20 }
 0x1c7   : > { %4374 = vmatprep.mubr.msk.f32.mxu1 %vm5530_vm1, %v5529_v2 }
 0x1ca   : > { %4375 = vmatmul.mubr.f32.gmra.mrb[44].mxu1 %v6170_v30 }
 0x1cb   : > { %4377 = vmatprep.mubr.msk.f32.mxu1 %vm5530_vm1, %v5529_v2 }
 0x1ce   : > { %4378 = vmatmul.mubr.f32.gmra.mrb[46].mxu1 %v6183_v21 }
 0x1cf   : > { %4380 = vmatprep.mubr.msk.f32.mxu1 %vm5530_vm1, %v5529_v2 }
 0x1d2   : > { %4381 = vmatmul.mubr.f32.gmra.mrb[48].mxu1 %v6196_v38 }
 0x1d3   : > { %4383 = vmatprep.mubr.msk.f32.mxu1 %vm5530_vm1, %v5529_v2 }
 0x1d6   : > { %4384 = vmatmul.mubr.f32.gmra.mrb[50].mxu1 %v6208_v35 }
 0x1d7   : > { %4394 = vmatprep.mubr.msk.f32.mxu1 %vm5530_vm1, %v5529_v2 }
 0x1da   : > { %4395 = vmatmul.mubr.f32.vlgmr.msra.gmra.mrb[26].mxu1 %v6061_v41  ;;  %v6367_v41 = vpack.c.bf16 %v2461_v15, %v2458_v55 }
 0x1db   : > { %4876 = vmatpush3.bf16.msra.mxu1 %v5938_v4  ;;  %4397 = vmatprep.mubr.msk.f32.mxu1 %vm5530_vm1, %v5529_v2 }
 0x1dc   : > { %4877 = vmatprep.subr.bf16.mxu1 %v5531_v9  ;;  %4894 = vmatpush3.bf16.msra.mxu0 %v6367_v41 }
 0x1dd   : > { %4895 = vmatprep.subr.bf16.mxu0 %v5531_v9 }
 0x1de   : > { %4398 = vmatmul.mubr.f32.gmra.mrb[28].mxu1 %v6072_v0  ;;  %v6371_v0 = vsub.f32 %v2408_v47, %v2461_v15 }
 0x1df   : > { %4400 = vmatprep.mubr.msk.f32.mxu1 %vm5530_vm1, %v5529_v2  ;;  %4879 = vmatpush3.bf16.msra.mxu1 %v5951_v5 }
 0x1e0   : > { %4880 = vmatprep.subr.bf16.mxu1 %v5531_v9 }
 0x1e2   : > { %4401 = vmatmul.mubr.f32.gmra.mrb[30].mxu1 %v6080_v62  ;;  %v6377_v62 = vsub.f32 %v2410_v16, %v2467_v33 }
 0x1e3   : > { %4403 = vmatprep.mubr.msk.f32.mxu1 %vm5530_vm1, %v5529_v2 }
 0x1e6   : > { %4404 = vmatmul.mubr.f32.gmra.mrb[32].mxu1 %v6095_v29 }
 0x1e7   : > { %4406 = vmatprep.mubr.msk.f32.mxu1 %vm5530_vm1, %v5529_v2 }
 0x1ea   : > { %4407 = vmatmul.mubr.f32.gmra.mrb[34].mxu1 %v6110_v56 }
 0x1eb   : > { %4409 = vmatprep.mubr.msk.f32.mxu1 %vm5530_vm1, %v5529_v2 }
 0x1ee   : > { %4410 = vmatmul.mubr.f32.gmra.mrb[36].mxu1 %v6123_v42 }
 0x1ef   : > { %4412 = vmatprep.mubr.msk.f32.mxu1 %vm5530_vm1, %v5529_v2 }
 0x1f2   : > { %4413 = vmatmul.mubr.f32.gmra.mrb[38].mxu1 %v6136_v23 }
 0x1f3   : > { %4415 = vmatprep.mubr.msk.f32.mxu1 %vm5530_vm1, %v5529_v2 }
 0x1f6   : > { %4416 = vmatmul.mubr.f32.gmra.mrb[40].mxu1 %v6149_v61 }
 0x1f7   : > { %4418 = vmatprep.mubr.msk.f32.mxu1 %vm5530_vm1, %v5529_v2 }
 0x1fa   : > { %4419 = vmatmul.mubr.f32.gmra.mrb[42].mxu1 %v6162_v25 }
 0x1fb   : > { %4421 = vmatprep.mubr.msk.f32.mxu1 %vm5530_vm1, %v5529_v2 }
 0x1fe   : > { %4422 = vmatmul.mubr.f32.gmra.mrb[44].mxu1 %v6175_v63 }
 0x1ff   : > { %4424 = vmatprep.mubr.msk.f32.mxu1 %vm5530_vm1, %v5529_v2 }
 0x202   : > { %4425 = vmatmul.mubr.f32.gmra.mrb[46].mxu1 %v6188_v26 }
 0x203   : > { %4427 = vmatprep.mubr.msk.f32.mxu1 %vm5530_vm1, %v5529_v2 }
 0x206   : > { %4428 = vmatmul.mubr.f32.gmra.mrb[48].mxu1 %v6200_v57 }
 0x207   : > { %4430 = vmatprep.mubr.msk.f32.mxu1 %vm5530_vm1, %v5529_v2 }
 0x20a   : > { %4431 = vmatmul.mubr.f32.gmra.mrb[50].mxu1 %v6212_v44 }
 0x20b   : > { %4441 = vmatprep.mubr.msk.f32.mxu1 %vm5530_vm1, %v5529_v2 }
 0x20e   : > { %4442 = vmatmul.mubr.f32.vlgmr.msra.gmra.mrb[26].mxu1 %v1464_v50  ;;  %v6369_v50 = vsub.f32 %v2407_v46, %v2458_v55 }
 0x20f   : > { %4882 = vmatpush3.bf16.msra.mxu1 %v4881_v52  ;;  %4444 = vmatprep.mubr.msk.f32.mxu1 %vm5530_vm1, %v5529_v2 }
 0x210   : > { %4883 = vmatprep.subr.bf16.mxu1 %v5531_v9 }
 0x212   : > { %4445 = vmatmul.mubr.f32.gmra.mrb[28].mxu1 %v1474_v22  ;;  %v6373_v22 = vsub.f32 %v2409_v48, %v2464_v28 }
 0x213   : > { %4447 = vmatprep.mubr.msk.f32.mxu1 %vm5530_vm1, %v5529_v2  ;;  %4885 = vmatpush3.bf16.msra.mxu1 %v4884_v59 }
 0x214   : > { %4886 = vmatprep.subr.bf16.mxu1 %v5531_v9  ;;  %v4908_v23 = vpack.c.bf16 %v6377_v62, %v6373_v22 }
 0x216   : > { %4448 = vmatmul.mubr.f32.gmra.mrb[30].mxu1 %v1484_v19  ;;  %v6382_v19 = vpack.c.bf16 %v2467_v33, %v2464_v28 }
 0x217   : > { %4450 = vmatprep.mubr.msk.f32.mxu1 %vm5530_vm1, %v5529_v2 }
 0x218   : > { %4897 = vmatpush3.bf16.msra.mxu0 %v6382_v19 }
 0x219   : > { %4898 = vmatprep.subr.bf16.mxu0 %v5531_v9 }
 0x21a   : > { %4451 = vmatmul.mubr.f32.gmra.mrb[32].mxu1 %v1494_v39  ;;  %v2680_v39 = vand.u32 4294901760, %v6377_v62 }
 0x21b   : > { %4453 = vmatprep.mubr.msk.f32.mxu1 %vm5530_vm1, %v5529_v2 }
 0x21e   : > { %4454 = vmatmul.mubr.f32.gmra.mrb[34].mxu1 %v1504_v3 }
 0x21f   : > { %4456 = vmatprep.mubr.msk.f32.mxu1 %vm5530_vm1, %v5529_v2 }
 0x222   : > { %4457 = vmatmul.mubr.f32.gmra.mrb[36].mxu1 %v1514_v18  ;;  %v4905_v18 = vpack.c.bf16 %v6371_v0, %v6369_v50 }
 0x223   : > { %4459 = vmatprep.mubr.msk.f32.mxu1 %vm5530_vm1, %v5529_v2 }
 0x226   : > { %4460 = vmatmul.mubr.f32.gmra.mrb[38].mxu1 %v1524_v45 }
 0x227   : > { %4462 = vmatprep.mubr.msk.f32.mxu1 %vm5530_vm1, %v5529_v2 }
 0x22a   : > { %4463 = vmatmul.mubr.f32.gmra.mrb[40].mxu1 %v1534_v49 }
 0x22b   : > { %4465 = vmatprep.mubr.msk.f32.mxu1 %vm5530_vm1, %v5529_v2 }
 0x22e   : > { %4466 = vmatmul.mubr.f32.gmra.mrb[42].mxu1 %v1544_v43 }
 0x22f   : > { %4468 = vmatprep.mubr.msk.f32.mxu1 %vm5530_vm1, %v5529_v2 }
 0x232   : > { %4469 = vmatmul.mubr.f32.gmra.mrb[44].mxu1 %v1554_v11 }
 0x233   : > { %4471 = vmatprep.mubr.msk.f32.mxu1 %vm5530_vm1, %v5529_v2 }
 0x236   : > { %4472 = vmatmul.mubr.f32.gmra.mrb[46].mxu1 %v1564_v8 }
 0x237   : > { %4474 = vmatprep.mubr.msk.f32.mxu1 %vm5530_vm1, %v5529_v2 }
 0x23a   : > { %4475 = vmatmul.mubr.f32.gmra.mrb[48].mxu1 %v1574_v6 }
 0x23b   : > { %4477 = vmatprep.mubr.msk.f32.mxu1 %vm5530_vm1, %v5529_v2 }
 0x23e   : > { %4478 = vmatmul.mubr.f32.gmra.mrb[50].mxu1 %v1584_v24 }
 0x23f   : > { %4488 = vmatprep.mubr.msk.f32.mxu1 %vm5530_vm1, %v5529_v2 }
 0x242   : > { %4489 = vmatmul.mubr.f32.vlgmr.msra.gmra.mrb[26].mxu1 %v6057_v32 }
 0x243   : > { %4888 = vmatpush3.bf16.msra.mxu1 %v5938_v4  ;;  %4491 = vmatprep.mubr.msk.f32.mxu1 %vm5530_vm1, %v5529_v2  ;;  %v2659_v4 = vand.u32 4294901760, %v6369_v50 }
 0x244   : > { %4889 = vmatprep.subr.bf16.mxu1 %v5531_v9 }
 0x246   : > { %4492 = vmatmul.mubr.f32.gmra.mrb[28].mxu1 %v6065_v53 }
 0x247   : > { %4494 = vmatprep.mubr.msk.f32.mxu1 %vm5530_vm1, %v5529_v2  ;;  %4891 = vmatpush3.bf16.msra.mxu1 %v5951_v5  ;;  %v2666_v5 = vand.u32 4294901760, %v6371_v0 }
 0x24a   : > { %4495 = vmatmul.mubr.f32.gmra.mrb[30].mxu1 %v6075_v17 }
 0x24b   : > { %4497 = vmatprep.mubr.msk.f32.mxu1 %vm5530_vm1, %v5529_v2 }
 0x24e   : > { %4498 = vmatmul.mubr.f32.gmra.mrb[32].mxu1 %v6089_v12 }
 0x24f   : > { %4500 = vmatprep.mubr.msk.f32.mxu1 %vm5530_vm1, %v5529_v2 }
 0x252   : > { %4501 = vmatmul.mubr.f32.gmra.mrb[34].mxu1 %v6104_v34 }
 0x253   : > { %4503 = vmatprep.mubr.msk.f32.mxu1 %vm5530_vm1, %v5529_v2 }
 0x256   : > { %4504 = vmatmul.mubr.f32.gmra.mrb[36].mxu1 %v6118_v60 }
 0x257   : > { %4506 = vmatprep.mubr.msk.f32.mxu1 %vm5530_vm1, %v5529_v2 }
 0x25a   : > { %4507 = vmatmul.mubr.f32.gmra.mrb[38].mxu1 %v6131_v10 }
 0x25b   : > { %4509 = vmatprep.mubr.msk.f32.mxu1 %vm5530_vm1, %v5529_v2 }
 0x25e   : > { %4510 = vmatmul.mubr.f32.gmra.mrb[40].mxu1 %v6144_v36 }
 0x25f   : > { %4512 = vmatprep.mubr.msk.f32.mxu1 %vm5530_vm1, %v5529_v2 }
 0x262   : > { %4513 = vmatmul.mubr.f32.gmra.mrb[42].mxu1 %v6157_v20 }
 0x263   : > { %4515 = vmatprep.mubr.msk.f32.mxu1 %vm5530_vm1, %v5529_v2 }
 0x266   : > { %4516 = vmatmul.mubr.f32.gmra.mrb[44].mxu1 %v6170_v30 }
 0x267   : > { %4518 = vmatprep.mubr.msk.f32.mxu1 %vm5530_vm1, %v5529_v2 }
 0x26a   : > { %4519 = vmatmul.mubr.f32.gmra.mrb[46].mxu1 %v6183_v21 }
 0x26b   : > { %4521 = vmatprep.mubr.msk.f32.mxu1 %vm5530_vm1, %v5529_v2 }
 0x26e   : > { %4522 = vmatmul.mubr.f32.gmra.mrb[48].mxu1 %v6196_v38 }
 0x26f   : > { %4524 = vmatprep.mubr.msk.f32.mxu1 %vm5530_vm1, %v5529_v2 }
 0x272   : > { %4525 = vmatmul.mubr.f32.gmra.mrb[50].mxu1 %v6208_v35 }
 0x273   : > { %4535 = vmatprep.mubr.msk.f32.mxu1 %vm5530_vm1, %v5529_v2 }
 0x276   : > { %4536 = vmatmul.mubr.f32.vlgmr.msra.gmra.mrb[26].mxu1 %v6057_v32  ;;  %v2660_v32 = vsub.f32 %v6369_v50, %v2659_v4 }
 0x277   : > { %4538 = vmatprep.mubr.msk.f32.mxu1 %vm5530_vm1, %v5529_v2 }
 0x27a   : > { %4539 = vmatmul.mubr.f32.gmra.mrb[28].mxu1 %v6065_v53  ;;  %v2667_v53 = vsub.f32 %v6371_v0, %v2666_v5 }
 0x27b   : > { %4541 = vmatprep.mubr.msk.f32.mxu1 %vm5530_vm1, %v5529_v2 }
 0x27e   : > { %4542 = vmatmul.mubr.f32.gmra.mrb[30].mxu1 %v6075_v17  ;;  %v2661_v17 = vand.u32 4294901760, %v2660_v32 }
 0x27f   : > { %4544 = vmatprep.mubr.msk.f32.mxu1 %vm5530_vm1, %v5529_v2 }
 0x282   : > { %4545 = vmatmul.mubr.f32.gmra.mrb[32].mxu1 %v6089_v12  ;;  %v2668_v12 = vand.u32 4294901760, %v2667_v53 }
 0x283   : > { %4547 = vmatprep.mubr.msk.f32.mxu1 %vm5530_vm1, %v5529_v2 }
 0x284   : > { %v4899_v29 = vpack.c.bf16 %v2668_v12, %v2661_v17 }
 0x286   : > { %4548 = vmatmul.mubr.f32.gmra.mrb[34].mxu1 %v6104_v34  ;;  %v2673_v34 = vand.u32 4294901760, %v6373_v22 }
 0x287   : > { %4550 = vmatprep.mubr.msk.f32.mxu1 %vm5530_vm1, %v5529_v2 }
 0x288   : > { %v2674_v56 = vsub.f32 %v6373_v22, %v2673_v34 }
 0x28a   : > { %4551 = vmatmul.mubr.f32.gmra.mrb[36].mxu1 %v6118_v60  ;;  %v2681_v60 = vsub.f32 %v6377_v62, %v2680_v39  ;;  %v2675_v3 = vand.u32 4294901760, %v2674_v56 }
 0x28b   : > { %4553 = vmatprep.mubr.msk.f32.mxu1 %vm5530_vm1, %v5529_v2 }
 0x28c   : > { %v2682_v42 = vand.u32 4294901760, %v2681_v60 }
 0x28e   : > { %4554 = vmatmul.mubr.f32.gmra.mrb[38].mxu1 %v6131_v10  ;;  %v4902_v10 = vpack.c.bf16 %v2682_v42, %v2675_v3 }
 0x28f   : > { %4556 = vmatprep.mubr.msk.f32.mxu1 %vm5530_vm1, %v5529_v2 }
 0x292   : > { %4557 = vmatmul.mubr.f32.gmra.mrb[40].mxu1 %v6144_v36  ;;  %v6509_v36 = vld [vmem:[%s7035_s4] ss:$0 sm:$0xff] }
 0x293   : > { %4559 = vmatprep.mubr.msk.f32.mxu1 %vm5530_vm1, %v5529_v2 }
 0x296   : > { %4560 = vmatmul.mubr.f32.gmra.mrb[42].mxu1 %v6157_v20 }
 0x297   : > { %4562 = vmatprep.mubr.msk.f32.mxu1 %vm5530_vm1, %v5529_v2 }
 0x29a   : > { %4563 = vmatmul.mubr.f32.gmra.mrb[44].mxu1 %v6170_v30 }
 0x29b   : > { %4565 = vmatprep.mubr.msk.f32.mxu1 %vm5530_vm1, %v5529_v2 }
 0x29e   : > { %4566 = vmatmul.mubr.f32.gmra.mrb[46].mxu1 %v6183_v21 }
 0x29f   : > { %4568 = vmatprep.mubr.msk.f32.mxu1 %vm5530_vm1, %v5529_v2 }
 0x2a2   : > { %4569 = vmatmul.mubr.f32.gmra.mrb[48].mxu1 %v6196_v38 }
 0x2a3   : > { %4571 = vmatprep.mubr.msk.f32.mxu1 %vm5530_vm1, %v5529_v2 }
 0x2a6   : > { %4572 = vmatmul.mubr.f32.gmra.mrb[50].mxu1 %v6208_v35 }
 0x349   : > { %v2318_v45 = vpop.f32.mrb[26].mxu1 }
 0x34a   : > { %v4954_v61 = vadd.f32 %v6509_v36, %v2318_v45  ;;  %v4537_v20 = vpop.f32.mrb[27].mxu1 }
 0x34c   : > { %v2394_v49 = vmax.f32 %v4954_v61, 0.0 }
 0x34d   : > { %v2324_v25 = vpop.f32.mrb[28].mxu1 }
 0x34e   : > { %v2419_v30 = vsel %vm1353_vm3, %v2394_v49, 0  ;;  %v4955_v43 = vadd.f32 %v6509_v36, %v2324_v25  ;;  %v4540_v63 = vpop.f32.mrb[29].mxu1 }
 0x34f   : > { %v6514_v21 = vand.u32 4294901760, %v2419_v30 }
 0x350   : > { %v2395_v11 = vmax.f32 %v4955_v43, 0.0 }
 0x351   : > { %v6517_v26 = vsub.f32 %v2419_v30, %v6514_v21  ;;  %v2330_v27 = vpop.f32.mrb[30].mxu1 }
 0x352   : > { %v2422_v31 = vsel %vm1353_vm3, %v2395_v11, 0  ;;  %v4956_v38 = vadd.f32 %v6509_v36, %v2330_v27  ;;  %v4543_v54 = vpop.f32.mrb[31].mxu1 }
 0x353   : > { %v2528_v8 = vand.u32 4294901760, %v6517_v26  ;;  %v6522_v51 = vand.u32 4294901760, %v2422_v31 }
 0x354   : > { %v2396_v57 = vmax.f32 %v4956_v38, 0.0 }
 0x355   : > { %v2529_v58 = vsub.f32 %v6517_v26, %v2528_v8  ;;  %v6528_v40 = vsub.f32 %v2422_v31, %v6522_v51  ;;  %v2336_v35 = vpop.f32.mrb[32].mxu1 }
 0x356   : > { %v2425_v1 = vsel %vm1353_vm3, %v2396_v57, 0  ;;  %v4957_v6 = vadd.f32 %v6509_v36, %v2336_v35  ;;  %v4546_v44 = vpop.f32.mrb[33].mxu1 }
 0x357   : > { %v2530_v7 = vand.u32 4294901760, %v2529_v58  ;;  %v6532_v14 = vand.u32 4294901760, %v2425_v1  ;;  %v2538_v24 = vand.u32 4294901760, %v6528_v40 }
 0x358   : > { %v2397_v13 = vmax.f32 %v4957_v6, 0.0 }
 0x359   : > { %v6536_v37 = vsub.f32 %v2425_v1, %v6532_v14  ;;  %v2342_v52 = vpop.f32.mrb[34].mxu1  ;;  %4583 = vmatmul.mubr.f32.vlgmr.msra.gmra.mrb[26].mxu0 %v2530_v7  ;;  %v2539_v59 = vsub.f32 %v6528_v40, %v2538_v24 }
 0x35a   : > { %v2428_v46 = vsel %vm1353_vm3, %v2397_v13, 0  ;;  %v4958_v47 = vadd.f32 %v6509_v36, %v2342_v52  ;;  %4900 = vmatpush3.bf16.msra.mxu0 %v4899_v29  ;;  %v4549_v48 = vpop.f32.mrb[35].mxu1  ;;  %4585 = vmatprep.mubr.msk.f32.mxu0 %vm5530_vm1, %v5529_v2 }
 0x35b   : > { %v6545_v55 = vand.u32 4294901760, %v2428_v46  ;;  %v2540_v15 = vand.u32 4294901760, %v2539_v59  ;;  %v2548_v16 = vand.u32 4294901760, %v6536_v37  ;;  %4901 = vmatprep.subr.bf16.mxu0 %v5531_v9 }
 0x35c   : > { %v2398_v28 = vmax.f32 %v4958_v47, 0.0 }
 0x35d   : > { %v6550_v33 = vsub.f32 %v2428_v46, %v6545_v55  ;;  %v2348_v32 = vpop.f32.mrb[36].mxu1  ;;  %4586 = vmatmul.mubr.f32.gmra.mrb[28].mxu0 %v2540_v15  ;;  %v2549_v53 = vsub.f32 %v6536_v37, %v2548_v16 }
 0x35e   : > { %v2431_v17 = vsel %vm1353_vm3, %v2398_v28, 0  ;;  %v4959_v12 = vadd.f32 %v6509_v36, %v2348_v32  ;;  %v4552_v29 = vpop.f32.mrb[37].mxu1  ;;  %4588 = vmatprep.mubr.msk.f32.mxu0 %vm5530_vm1, %v5529_v2  ;;  %4903 = vmatpush3.bf16.msra.mxu0 %v4902_v10 }
 0x35f   : > { %v6559_v56 = vand.u32 4294901760, %v2431_v17  ;;  %v2550_v60 = vand.u32 4294901760, %v2549_v53  ;;  %v2558_v3 = vand.u32 4294901760, %v6550_v33  ;;  %4904 = vmatprep.subr.bf16.mxu0 %v5531_v9 }
 0x360   : > { %v2399_v42 = vmax.f32 %v4959_v12, 0.0 }
 0x361   : > { %v6564_v45 = vsub.f32 %v2431_v17, %v6559_v56  ;;  %v2354_v61 = vpop.f32.mrb[38].mxu1  ;;  %4589 = vmatmul.mubr.f32.gmra.mrb[30].mxu0 %v2550_v60  ;;  %v2559_v20 = vsub.f32 %v6550_v33, %v2558_v3 }
 0x362   : > { %v2434_v49 = vsel %vm1353_vm3, %v2399_v42, 0  ;;  %v4960_v10 = vadd.f32 %v6509_v36, %v2354_v61  ;;  %v4555_v25 = vpop.f32.mrb[39].mxu1  ;;  %4591 = vmatprep.mubr.msk.f32.mxu0 %vm5530_vm1, %v5529_v2 }
 0x363   : > { %v6573_v30 = vand.u32 4294901760, %v2434_v49  ;;  %v2560_v43 = vand.u32 4294901760, %v2559_v20  ;;  %v2568_v63 = vand.u32 4294901760, %v6564_v45 }
 0x364   : > { %v2400_v11 = vmax.f32 %v4960_v10, 0.0 }
 0x365   : > { %v6577_v27 = vsub.f32 %v2434_v49, %v6573_v30  ;;  %v2360_v31 = vpop.f32.mrb[40].mxu1  ;;  %4592 = vmatmul.mubr.f32.gmra.mrb[32].mxu0 %v2560_v43  ;;  %v2569_v38 = vsub.f32 %v6564_v45, %v2568_v63 }
 0x366   : > { %v2437_v54 = vsel %vm1353_vm3, %v2400_v11, 0  ;;  %v4961_v57 = vadd.f32 %v6509_v36, %v2360_v31  ;;  %v4558_v58 = vpop.f32.mrb[41].mxu1  ;;  %4594 = vmatprep.mubr.msk.f32.mxu0 %vm5530_vm1, %v5529_v2 }
 0x367   : > { %v6586_v35 = vand.u32 4294901760, %v2437_v54  ;;  %v2570_v1 = vand.u32 4294901760, %v2569_v38  ;;  %v2578_v6 = vand.u32 4294901760, %v6577_v27 }
 0x368   : > { %v2401_v44 = vmax.f32 %v4961_v57, 0.0 }
 0x369   : > { %v6590_v7 = vsub.f32 %v2437_v54, %v6586_v35  ;;  %v2366_v13 = vpop.f32.mrb[42].mxu1  ;;  %4595 = vmatmul.mubr.f32.gmra.mrb[34].mxu0 %v2570_v1  ;;  %v2579_v52 = vsub.f32 %v6577_v27, %v2578_v6 }
 0x36a   : > { %v2440_v59 = vsel %vm1353_vm3, %v2401_v44, 0  ;;  %v4962_v46 = vadd.f32 %v6509_v36, %v2366_v13  ;;  %v4561_v47 = vpop.f32.mrb[43].mxu1  ;;  %4597 = vmatprep.mubr.msk.f32.mxu0 %vm5530_vm1, %v5529_v2 }
 0x36b   : > { %v6599_v48 = vand.u32 4294901760, %v2440_v59  ;;  %v2580_v15 = vand.u32 4294901760, %v2579_v52  ;;  %v2588_v28 = vand.u32 4294901760, %v6590_v7 }
 0x36c   : > { %v2402_v32 = vmax.f32 %v4962_v46, 0.0 }
 0x36d   : > { %v6603_v53 = vsub.f32 %v2440_v59, %v6599_v48  ;;  %v2372_v17 = vpop.f32.mrb[44].mxu1  ;;  %4598 = vmatmul.mubr.f32.gmra.mrb[36].mxu0 %v2580_v15  ;;  %v2589_v12 = vsub.f32 %v6590_v7, %v2588_v28 }
 0x36e   : > { %v2443_v29 = vsel %vm1353_vm3, %v2402_v32, 0  ;;  %v4963_v60 = vadd.f32 %v6509_v36, %v2372_v17  ;;  %v4564_v42 = vpop.f32.mrb[45].mxu1  ;;  %4600 = vmatprep.mubr.msk.f32.mxu0 %vm5530_vm1, %v5529_v2 }
 0x36f   : > { %v6612_v61 = vand.u32 4294901760, %v2443_v29  ;;  %v2590_v20 = vand.u32 4294901760, %v2589_v12  ;;  %v2598_v49 = vand.u32 4294901760, %v6603_v53 }
 0x370   : > { %v2403_v10 = vmax.f32 %v4963_v60, 0.0 }
 0x371   : > { %v6616_v25 = vsub.f32 %v2443_v29, %v6612_v61  ;;  %v2378_v43 = vpop.f32.mrb[46].mxu1  ;;  %4601 = vmatmul.mubr.f32.gmra.mrb[38].mxu0 %v2590_v20  ;;  %v2599_v11 = vsub.f32 %v6603_v53, %v2598_v49 }
 0x372   : > { %v2446_v31 = vsel %vm1353_vm3, %v2403_v10, 0  ;;  %v4964_v38 = vadd.f32 %v6509_v36, %v2378_v43  ;;  %v4567_v54 = vpop.f32.mrb[47].mxu1  ;;  %4603 = vmatprep.mubr.msk.f32.mxu0 %vm5530_vm1, %v5529_v2 }
 0x373   : > { %v6625_v57 = vand.u32 4294901760, %v2446_v31  ;;  %v2600_v58 = vand.u32 4294901760, %v2599_v11  ;;  %v2608_v1 = vand.u32 4294901760, %v6616_v25 }
 0x374   : > { %v2404_v44 = vmax.f32 %v4964_v38, 0.0 }
 0x375   : > { %v6629_v13 = vsub.f32 %v2446_v31, %v6625_v57  ;;  %v2384_v52 = vpop.f32.mrb[48].mxu1  ;;  %4604 = vmatmul.mubr.f32.gmra.mrb[40].mxu0 %v2600_v58  ;;  %v2609_v59 = vsub.f32 %v6616_v25, %v2608_v1 }
 0x376   : > { %v2449_v46 = vsel %vm1353_vm3, %v2404_v44, 0  ;;  %v4965_v47 = vadd.f32 %v6509_v36, %v2384_v52  ;;  %v4570_v15 = vpop.f32.mrb[49].mxu1  ;;  %4606 = vmatprep.mubr.msk.f32.mxu0 %vm5530_vm1, %v5529_v2 }
 0x377   : > { %v6638_v32 = vand.u32 4294901760, %v2449_v46  ;;  %v2610_v17 = vand.u32 4294901760, %v2609_v59  ;;  %v2618_v12 = vand.u32 4294901760, %v6629_v13 }
 0x378   : > { %v2405_v29 = vmax.f32 %v4965_v47, 0.0 }
 0x379   : > { %v6642_v60 = vsub.f32 %v2449_v46, %v6638_v32  ;;  %v2390_v42 = vpop.f32.mrb[50].mxu1  ;;  %4607 = vmatmul.mubr.f32.gmra.mrb[42].mxu0 %v2610_v17  ;;  %v2619_v20 = vsub.f32 %v6629_v13, %v2618_v12 }
 0x37a   : > { %v2452_v10 = vsel %vm1353_vm3, %v2405_v29, 0  ;;  %v4966_v43 = vadd.f32 %v6509_v36, %v2390_v42  ;;  %v4573_v11 = vpop.f32.mrb[51].mxu1  ;;  %4609 = vmatprep.mubr.msk.f32.mxu0 %vm5530_vm1, %v5529_v2 }
 0x37b   : > { %v6651_v31 = vand.u32 4294901760, %v2452_v10  ;;  %v2620_v38 = vand.u32 4294901760, %v2619_v20  ;;  %v2628_v54 = vand.u32 4294901760, %v6642_v60 }
 0x37c   : > { %v2406_v58 = vmax.f32 %v4966_v43, 0.0 }
 0x37d   : > { %v6655_v44 = vsub.f32 %v2452_v10, %v6651_v31  ;;  %4610 = vmatmul.mubr.f32.gmra.mrb[44].mxu0 %v2620_v38  ;;  %v2629_v52 = vsub.f32 %v6642_v60, %v2628_v54 }
 0x37e   : > { %v2455_v36 = vsel %vm1353_vm3, %v2406_v58, 0  ;;  %4612 = vmatprep.mubr.msk.f32.mxu0 %vm5530_vm1, %v5529_v2 }
 0x37f   : > { %v6663_v59 = vand.u32 4294901760, %v2455_v36  ;;  %v2630_v46 = vand.u32 4294901760, %v2629_v52  ;;  %v2638_v47 = vand.u32 4294901760, %v6655_v44 }
 0x381   : > { %v6667_v15 = vsub.f32 %v2455_v36, %v6663_v59  ;;  %4613 = vmatmul.mubr.f32.gmra.mrb[46].mxu0 %v2630_v46  ;;  %v2639_v17 = vsub.f32 %v6655_v44, %v2638_v47 }
 0x382   : > { %4615 = vmatprep.mubr.msk.f32.mxu0 %vm5530_vm1, %v5529_v2 }
 0x383   : > { %v2640_v29 = vand.u32 4294901760, %v2639_v17  ;;  %v2648_v42 = vand.u32 4294901760, %v6667_v15 }
 0x385   : > { %4616 = vmatmul.mubr.f32.gmra.mrb[48].mxu0 %v2640_v29  ;;  %v2649_v20 = vsub.f32 %v6667_v15, %v2648_v42 }
 0x386   : > { %4618 = vmatprep.mubr.msk.f32.mxu0 %vm5530_vm1, %v5529_v2 }
 0x387   : > { %v2650_v10 = vand.u32 4294901760, %v2649_v20 }
 0x389   : > { %4619 = vmatmul.mubr.f32.gmra.mrb[50].mxu0 %v2650_v10 }
 0x38a   : > { %4629 = vmatprep.mubr.msk.f32.mxu0 %vm5530_vm1, %v5529_v2 }
 0x38d   : > { %4630 = vmatmul.mubr.f32.vlgmr.msra.gmra.mrb[26].mxu0 %v6514_v21 }
 0x38e   : > { %4906 = vmatpush3.bf16.msra.mxu0 %v4905_v18  ;;  %4632 = vmatprep.mubr.msk.f32.mxu0 %vm5530_vm1, %v5529_v2  ;;  %v4917_v18 = vpack.c.bf16 %v2666_v5, %v2659_v4 }
 0x38f   : > { %4907 = vmatprep.subr.bf16.mxu0 %v5531_v9 }
 0x391   : > { %4633 = vmatmul.mubr.f32.gmra.mrb[28].mxu0 %v6522_v51 }
 0x392   : > { %4635 = vmatprep.mubr.msk.f32.mxu0 %vm5530_vm1, %v5529_v2  ;;  %4909 = vmatpush3.bf16.msra.mxu0 %v4908_v23  ;;  %v4920_v23 = vpack.c.bf16 %v2680_v39, %v2673_v34 }
 0x393   : > { %4910 = vmatprep.subr.bf16.mxu0 %v5531_v9 }
 0x395   : > { %4636 = vmatmul.mubr.f32.gmra.mrb[30].mxu0 %v6532_v14 }
 0x396   : > { %4638 = vmatprep.mubr.msk.f32.mxu0 %vm5530_vm1, %v5529_v2 }
 0x399   : > { %4639 = vmatmul.mubr.f32.gmra.mrb[32].mxu0 %v6545_v55 }
 0x39a   : > { %4641 = vmatprep.mubr.msk.f32.mxu0 %vm5530_vm1, %v5529_v2 }
 0x39d   : > { %4642 = vmatmul.mubr.f32.gmra.mrb[34].mxu0 %v6559_v56 }
 0x39e   : > { %4644 = vmatprep.mubr.msk.f32.mxu0 %vm5530_vm1, %v5529_v2 }
 0x3a1   : > { %4645 = vmatmul.mubr.f32.gmra.mrb[36].mxu0 %v6573_v30 }
 0x3a2   : > { %4647 = vmatprep.mubr.msk.f32.mxu0 %vm5530_vm1, %v5529_v2 }
 0x3a5   : > { %4648 = vmatmul.mubr.f32.gmra.mrb[38].mxu0 %v6586_v35 }
 0x3a6   : > { %4650 = vmatprep.mubr.msk.f32.mxu0 %vm5530_vm1, %v5529_v2 }
 0x3a9   : > { %4651 = vmatmul.mubr.f32.gmra.mrb[40].mxu0 %v6599_v48 }
 0x3aa   : > { %4653 = vmatprep.mubr.msk.f32.mxu0 %vm5530_vm1, %v5529_v2 }
 0x3ad   : > { %4654 = vmatmul.mubr.f32.gmra.mrb[42].mxu0 %v6612_v61 }
 0x3ae   : > { %4656 = vmatprep.mubr.msk.f32.mxu0 %vm5530_vm1, %v5529_v2 }
 0x3b1   : > { %4657 = vmatmul.mubr.f32.gmra.mrb[44].mxu0 %v6625_v57 }
 0x3b2   : > { %4659 = vmatprep.mubr.msk.f32.mxu0 %vm5530_vm1, %v5529_v2 }
 0x3b5   : > { %4660 = vmatmul.mubr.f32.gmra.mrb[46].mxu0 %v6638_v32 }
 0x3b6   : > { %4662 = vmatprep.mubr.msk.f32.mxu0 %vm5530_vm1, %v5529_v2 }
 0x3b9   : > { %4663 = vmatmul.mubr.f32.gmra.mrb[48].mxu0 %v6651_v31 }
 0x3ba   : > { %4665 = vmatprep.mubr.msk.f32.mxu0 %vm5530_vm1, %v5529_v2 }
 0x3bd   : > { %4666 = vmatmul.mubr.f32.gmra.mrb[50].mxu0 %v6663_v59 }
 0x3be   : > { %4676 = vmatprep.mubr.msk.f32.mxu0 %vm5530_vm1, %v5529_v2 }
 0x3c1   : > { %4677 = vmatmul.mubr.f32.vlgmr.msra.gmra.mrb[26].mxu0 %v6517_v26 }
 0x3c2   : > { %4912 = vmatpush3.bf16.msra.mxu0 %v6367_v41  ;;  %4679 = vmatprep.mubr.msk.f32.mxu0 %vm5530_vm1, %v5529_v2 }
 0x3c3   : > { %4913 = vmatprep.subr.bf16.mxu0 %v5531_v9 }
 0x3c5   : > { %4680 = vmatmul.mubr.f32.gmra.mrb[28].mxu0 %v6528_v40 }
 0x3c6   : > { %4682 = vmatprep.mubr.msk.f32.mxu0 %vm5530_vm1, %v5529_v2  ;;  %4915 = vmatpush3.bf16.msra.mxu0 %v6382_v19 }
 0x3c7   : > { %4916 = vmatprep.subr.bf16.mxu0 %v5531_v9 }
 0x3c9   : > { %4683 = vmatmul.mubr.f32.gmra.mrb[30].mxu0 %v6536_v37 }
 0x3ca   : > { %4685 = vmatprep.mubr.msk.f32.mxu0 %vm5530_vm1, %v5529_v2 }
 0x3cd   : > { %4686 = vmatmul.mubr.f32.gmra.mrb[32].mxu0 %v6550_v33 }
 0x3ce   : > { %4688 = vmatprep.mubr.msk.f32.mxu0 %vm5530_vm1, %v5529_v2 }
 0x3d1   : > { %4689 = vmatmul.mubr.f32.gmra.mrb[34].mxu0 %v6564_v45 }
 0x3d2   : > { %4691 = vmatprep.mubr.msk.f32.mxu0 %vm5530_vm1, %v5529_v2 }
 0x3d5   : > { %4692 = vmatmul.mubr.f32.gmra.mrb[36].mxu0 %v6577_v27 }
 0x3d6   : > { %4694 = vmatprep.mubr.msk.f32.mxu0 %vm5530_vm1, %v5529_v2 }
 0x3d9   : > { %4695 = vmatmul.mubr.f32.gmra.mrb[38].mxu0 %v6590_v7 }
 0x3da   : > { %4697 = vmatprep.mubr.msk.f32.mxu0 %vm5530_vm1, %v5529_v2 }
 0x3dd   : > { %4698 = vmatmul.mubr.f32.gmra.mrb[40].mxu0 %v6603_v53 }
 0x3de   : > { %4700 = vmatprep.mubr.msk.f32.mxu0 %vm5530_vm1, %v5529_v2 }
 0x3e1   : > { %4701 = vmatmul.mubr.f32.gmra.mrb[42].mxu0 %v6616_v25 }
 0x3e2   : > { %4703 = vmatprep.mubr.msk.f32.mxu0 %vm5530_vm1, %v5529_v2 }
 0x3e5   : > { %4704 = vmatmul.mubr.f32.gmra.mrb[44].mxu0 %v6629_v13 }
 0x3e6   : > { %4706 = vmatprep.mubr.msk.f32.mxu0 %vm5530_vm1, %v5529_v2 }
 0x3e9   : > { %4707 = vmatmul.mubr.f32.gmra.mrb[46].mxu0 %v6642_v60 }
 0x3ea   : > { %4709 = vmatprep.mubr.msk.f32.mxu0 %vm5530_vm1, %v5529_v2 }
 0x3ed   : > { %4710 = vmatmul.mubr.f32.gmra.mrb[48].mxu0 %v6655_v44 }
 0x3ee   : > { %4712 = vmatprep.mubr.msk.f32.mxu0 %vm5530_vm1, %v5529_v2 }
 0x3f1   : > { %4713 = vmatmul.mubr.f32.gmra.mrb[50].mxu0 %v6667_v15 }
 0x3f2   : > { %4723 = vmatprep.mubr.msk.f32.mxu0 %vm5530_vm1, %v5529_v2 }
 0x3f5   : > { %4724 = vmatmul.mubr.f32.vlgmr.msra.gmra.mrb[26].mxu0 %v2528_v8 }
 0x3f6   : > { %4918 = vmatpush3.bf16.msra.mxu0 %v4917_v18  ;;  %4726 = vmatprep.mubr.msk.f32.mxu0 %vm5530_vm1, %v5529_v2 }
 0x3f7   : > { %4919 = vmatprep.subr.bf16.mxu0 %v5531_v9 }
 0x3f9   : > { %4727 = vmatmul.mubr.f32.gmra.mrb[28].mxu0 %v2538_v24 }
 0x3fa   : > { %4729 = vmatprep.mubr.msk.f32.mxu0 %vm5530_vm1, %v5529_v2  ;;  %4921 = vmatpush3.bf16.msra.mxu0 %v4920_v23 }
 0x3fb   : > { %4922 = vmatprep.subr.bf16.mxu0 %v5531_v9 }
 0x3fd   : > { %4730 = vmatmul.mubr.f32.gmra.mrb[30].mxu0 %v2548_v16 }
 0x3fe   : > { %4732 = vmatprep.mubr.msk.f32.mxu0 %vm5530_vm1, %v5529_v2 }
 0x401   : > { %4733 = vmatmul.mubr.f32.gmra.mrb[32].mxu0 %v2558_v3 }
 0x402   : > { %4735 = vmatprep.mubr.msk.f32.mxu0 %vm5530_vm1, %v5529_v2 }
 0x405   : > { %4736 = vmatmul.mubr.f32.gmra.mrb[34].mxu0 %v2568_v63 }
 0x406   : > { %4738 = vmatprep.mubr.msk.f32.mxu0 %vm5530_vm1, %v5529_v2 }
 0x409   : > { %4739 = vmatmul.mubr.f32.gmra.mrb[36].mxu0 %v2578_v6 }
 0x40a   : > { %4741 = vmatprep.mubr.msk.f32.mxu0 %vm5530_vm1, %v5529_v2 }
 0x40d   : > { %4742 = vmatmul.mubr.f32.gmra.mrb[38].mxu0 %v2588_v28 }
 0x40e   : > { %4744 = vmatprep.mubr.msk.f32.mxu0 %vm5530_vm1, %v5529_v2 }
 0x411   : > { %4745 = vmatmul.mubr.f32.gmra.mrb[40].mxu0 %v2598_v49 }
 0x412   : > { %4747 = vmatprep.mubr.msk.f32.mxu0 %vm5530_vm1, %v5529_v2 }
 0x415   : > { %4748 = vmatmul.mubr.f32.gmra.mrb[42].mxu0 %v2608_v1 }
 0x416   : > { %4750 = vmatprep.mubr.msk.f32.mxu0 %vm5530_vm1, %v5529_v2 }
 0x419   : > { %4751 = vmatmul.mubr.f32.gmra.mrb[44].mxu0 %v2618_v12 }
 0x41a   : > { %4753 = vmatprep.mubr.msk.f32.mxu0 %vm5530_vm1, %v5529_v2 }
 0x41d   : > { %4754 = vmatmul.mubr.f32.gmra.mrb[46].mxu0 %v2628_v54 }
 0x41e   : > { %4756 = vmatprep.mubr.msk.f32.mxu0 %vm5530_vm1, %v5529_v2 }
 0x421   : > { %4757 = vmatmul.mubr.f32.gmra.mrb[48].mxu0 %v2638_v47 }
 0x422   : > { %4759 = vmatprep.mubr.msk.f32.mxu0 %vm5530_vm1, %v5529_v2 }
 0x425   : > { %4760 = vmatmul.mubr.f32.gmra.mrb[50].mxu0 %v2648_v42 }
 0x426   : > { %4770 = vmatprep.mubr.msk.f32.mxu0 %vm5530_vm1, %v5529_v2 }
 0x429   : > { %4771 = vmatmul.mubr.f32.vlgmr.msra.gmra.mrb[26].mxu0 %v6514_v21 }
 0x42a   : > { %4924 = vmatpush3.bf16.msra.mxu0 %v6367_v41  ;;  %4773 = vmatprep.mubr.msk.f32.mxu0 %vm5530_vm1, %v5529_v2 }
 0x42b   : > { %4925 = vmatprep.subr.bf16.mxu0 %v5531_v9  ;;  %v3744_v9 = vld [vmem:[#allocation2] ss:$0 sm:$0xff] }
 0x42d   : > { %4774 = vmatmul.mubr.f32.gmra.mrb[28].mxu0 %v6522_v51 }
 0x42e   : > { %4776 = vmatprep.mubr.msk.f32.mxu0 %vm5530_vm1, %v5529_v2  ;;  %4927 = vmatpush3.bf16.msra.mxu0 %v6382_v19 }
 0x431   : > { %4777 = vmatmul.mubr.f32.gmra.mrb[30].mxu0 %v6532_v14 }
 0x432   : > { %4779 = vmatprep.mubr.msk.f32.mxu0 %vm5530_vm1, %v5529_v2 }
 0x435   : > { %4780 = vmatmul.mubr.f32.gmra.mrb[32].mxu0 %v6545_v55 }
 0x436   : > { %4782 = vmatprep.mubr.msk.f32.mxu0 %vm5530_vm1, %v5529_v2 }
 0x439   : > { %4783 = vmatmul.mubr.f32.gmra.mrb[34].mxu0 %v6559_v56 }
 0x43a   : > { %4785 = vmatprep.mubr.msk.f32.mxu0 %vm5530_vm1, %v5529_v2 }
 0x43d   : > { %4786 = vmatmul.mubr.f32.gmra.mrb[36].mxu0 %v6573_v30 }
 0x43e   : > { %4788 = vmatprep.mubr.msk.f32.mxu0 %vm5530_vm1, %v5529_v2 }
 0x441   : > { %4789 = vmatmul.mubr.f32.gmra.mrb[38].mxu0 %v6586_v35 }
 0x442   : > { %4791 = vmatprep.mubr.msk.f32.mxu0 %vm5530_vm1, %v5529_v2 }
 0x445   : > { %4792 = vmatmul.mubr.f32.gmra.mrb[40].mxu0 %v6599_v48 }
 0x446   : > { %4794 = vmatprep.mubr.msk.f32.mxu0 %vm5530_vm1, %v5529_v2 }
 0x449   : > { %4795 = vmatmul.mubr.f32.gmra.mrb[42].mxu0 %v6612_v61 }
 0x44a   : > { %4797 = vmatprep.mubr.msk.f32.mxu0 %vm5530_vm1, %v5529_v2 }
 0x44d   : > { %4798 = vmatmul.mubr.f32.gmra.mrb[44].mxu0 %v6625_v57 }
 0x44e   : > { %4800 = vmatprep.mubr.msk.f32.mxu0 %vm5530_vm1, %v5529_v2 }
 0x451   : > { %4801 = vmatmul.mubr.f32.gmra.mrb[46].mxu0 %v6638_v32 }
 0x452   : > { %4803 = vmatprep.mubr.msk.f32.mxu0 %vm5530_vm1, %v5529_v2 }
 0x455   : > { %4804 = vmatmul.mubr.f32.gmra.mrb[48].mxu0 %v6651_v31 }
 0x456   : > { %4806 = vmatprep.mubr.msk.f32.mxu0 %vm5530_vm1, %v5529_v2 }
 0x459   : > { %4807 = vmatmul.mubr.f32.gmra.mrb[50].mxu0 %v6663_v59 }
 0x45a   : > { %4817 = vmatprep.mubr.msk.f32.mxu0 %vm5530_vm1, %v5529_v2 }
 0x45d   : > { %4818 = vmatmul.mubr.f32.vlgmr.msra.gmra.mrb[26].mxu0 %v6514_v21 }
 0x45e   : > { %4820 = vmatprep.mubr.msk.f32.mxu0 %vm5530_vm1, %v5529_v2 }
 0x461   : > { %4821 = vmatmul.mubr.f32.gmra.mrb[28].mxu0 %v6522_v51 }
 0x462   : > { %4823 = vmatprep.mubr.msk.f32.mxu0 %vm5530_vm1, %v5529_v2 }
 0x465   : > { %4824 = vmatmul.mubr.f32.gmra.mrb[30].mxu0 %v6532_v14 }
 0x466   : > { %4826 = vmatprep.mubr.msk.f32.mxu0 %vm5530_vm1, %v5529_v2 }
 0x469   : > { %4827 = vmatmul.mubr.f32.gmra.mrb[32].mxu0 %v6545_v55 }
 0x46a   : > { %4829 = vmatprep.mubr.msk.f32.mxu0 %vm5530_vm1, %v5529_v2 }
 0x46d   : > { %4830 = vmatmul.mubr.f32.gmra.mrb[34].mxu0 %v6559_v56 }
 0x46e   : > { %4832 = vmatprep.mubr.msk.f32.mxu0 %vm5530_vm1, %v5529_v2 }
 0x471   : > { %4833 = vmatmul.mubr.f32.gmra.mrb[36].mxu0 %v6573_v30 }
 0x472   : > { %4835 = vmatprep.mubr.msk.f32.mxu0 %vm5530_vm1, %v5529_v2 }
 0x475   : > { %4836 = vmatmul.mubr.f32.gmra.mrb[38].mxu0 %v6586_v35 }
 0x476   : > { %4838 = vmatprep.mubr.msk.f32.mxu0 %vm5530_vm1, %v5529_v2 }
 0x479   : > { %4839 = vmatmul.mubr.f32.gmra.mrb[40].mxu0 %v6599_v48 }
 0x47a   : > { %4841 = vmatprep.mubr.msk.f32.mxu0 %vm5530_vm1, %v5529_v2 }
 0x47d   : > { %4842 = vmatmul.mubr.f32.gmra.mrb[42].mxu0 %v6612_v61 }
 0x47e   : > { %4844 = vmatprep.mubr.msk.f32.mxu0 %vm5530_vm1, %v5529_v2 }
 0x481   : > { %4845 = vmatmul.mubr.f32.gmra.mrb[44].mxu0 %v6625_v57 }
 0x482   : > { %4847 = vmatprep.mubr.msk.f32.mxu0 %vm5530_vm1, %v5529_v2 }
 0x485   : > { %4848 = vmatmul.mubr.f32.gmra.mrb[46].mxu0 %v6638_v32 }
 0x486   : > { %4850 = vmatprep.mubr.msk.f32.mxu0 %vm5530_vm1, %v5529_v2 }
 0x489   : > { %4851 = vmatmul.mubr.f32.gmra.mrb[48].mxu0 %v6651_v31 }
 0x48a   : > { %4853 = vmatprep.mubr.msk.f32.mxu0 %vm5530_vm1, %v5529_v2 }
 0x48d   : > { %4854 = vmatmul.mubr.f32.gmra.mrb[50].mxu0 %v6663_v59 }
 0x530   : > { %v3382_v41 = vpop.f32.mrb[26].mxu0 }
 0x531   : > { %v4967_v50 = vadd.f32 %v3744_v9, %v3382_v41  ;;  %v4819_v0 = vpop.f32.mrb[27].mxu0 }
 0x533   : > { %3459 = vst.msk [vmem:[%s6914_s24] sm:$0xff] %vm3458_vm4, %v4967_v50 }
 0x534   : > { %v3388_v22 = vpop.f32.mrb[28].mxu0 }
 0x535   : > { %v4968_v2 = vadd.f32 %v3744_v9, %v3388_v22  ;;  %v4822_v62 = vpop.f32.mrb[29].mxu0 }
 0x537   : > { %3460 = vst.msk [vmem:[%s6914_s24 + $0x8] sm:$0xff] %vm3458_vm4, %v4968_v2 }
 0x538   : > { %v3394_v19 = vpop.f32.mrb[30].mxu0 }
 0x539   : > { %v4969_v4 = vadd.f32 %v3744_v9, %v3394_v19  ;;  %v4825_v5 = vpop.f32.mrb[31].mxu0 }
 0x53b   : > { %3461 = vst.msk [vmem:[%s6914_s24 + $0x10] sm:$0xff] %vm3458_vm4, %v4969_v4 }
 0x53c   : > { %v3400_v34 = vpop.f32.mrb[32].mxu0 }
 0x53d   : > { %v4970_v39 = vadd.f32 %v3744_v9, %v3400_v34  ;;  %v4828_v21 = vpop.f32.mrb[33].mxu0 }
 0x53f   : > { %3462 = vst.msk [vmem:[%s6914_s24 + $0x18] sm:$0xff] %vm3458_vm4, %v4970_v39 }
 0x540   : > { %v3406_v26 = vpop.f32.mrb[34].mxu0 }
 0x541   : > { %v4971_v8 = vadd.f32 %v3744_v9, %v3406_v26  ;;  %v4831_v51 = vpop.f32.mrb[35].mxu0 }
 0x543   : > { %3463 = vst.msk [vmem:[%s6914_s24 + $0x20] sm:$0xff] %vm3458_vm4, %v4971_v8 }
 0x544   : > { %v3412_v40 = vpop.f32.mrb[36].mxu0 }
 0x545   : > { %v4972_v14 = vadd.f32 %v3744_v9, %v3412_v40  ;;  %v4834_v24 = vpop.f32.mrb[37].mxu0 }
 0x547   : > { %3464 = vst.msk [vmem:[%s6914_s24 + $0x28] sm:$0xff] %vm3458_vm4, %v4972_v14 }
 0x548   : > { %v3418_v37 = vpop.f32.mrb[38].mxu0 }
 0x549   : > { %v4973_v55 = vadd.f32 %v3744_v9, %v3418_v37  ;;  %v4837_v16 = vpop.f32.mrb[39].mxu0 }
 0x54b   : > { %3465 = vst.msk [vmem:[%s6914_s24 + $0x30] sm:$0xff] %vm3458_vm4, %v4973_v55 }
 0x54c   : > { %v3424_v33 = vpop.f32.mrb[40].mxu0 }
 0x54d   : > { %v4974_v56 = vadd.f32 %v3744_v9, %v3424_v33  ;;  %v4840_v3 = vpop.f32.mrb[41].mxu0 }
 0x54f   : > { %3466 = vst.msk [vmem:[%s6914_s24 + $0x38] sm:$0xff] %vm3458_vm4, %v4974_v56 }
 0x550   : > { %v3430_v45 = vpop.f32.mrb[42].mxu0 }
 0x551   : > { %v4975_v30 = vadd.f32 %v3744_v9, %v3430_v45  ;;  %v4843_v63 = vpop.f32.mrb[43].mxu0 }
 0x553   : > { %3467 = vst.msk [vmem:[%s6914_s24 + $0x40] sm:$0xff] %vm3458_vm4, %v4975_v30 }
 0x554   : > { %v3436_v27 = vpop.f32.mrb[44].mxu0 }
 0x555   : > { %v4976_v35 = vadd.f32 %v3744_v9, %v3436_v27  ;;  %v4846_v6 = vpop.f32.mrb[45].mxu0 }
 0x557   : > { %3468 = vst.msk [vmem:[%s6914_s24 + $0x48] sm:$0xff] %vm3458_vm4, %v4976_v35 }
 0x558   : > { %v3442_v7 = vpop.f32.mrb[46].mxu0 }
 0x559   : > { %v4977_v48 = vadd.f32 %v3744_v9, %v3442_v7  ;;  %v4849_v28 = vpop.f32.mrb[47].mxu0 }
 0x55b   : > { %3469 = vst.msk [vmem:[%s6914_s24 + $0x50] sm:$0xff] %vm3458_vm4, %v4977_v48 }
 0x55c   : > { %v3448_v53 = vpop.f32.mrb[48].mxu0 }
 0x55d   : > { %v4978_v61 = vadd.f32 %v3744_v9, %v3448_v53  ;;  %v4852_v49 = vpop.f32.mrb[49].mxu0  ;;  %3478 = sbr.rel (!%p5600_p4) target bundleno = 1441 (0x5a1), region = 52 }
 0x55f   : > { %3470 = vst.msk [vmem:[%s6914_s24 + $0x58] sm:$0xff] %vm3458_vm4, %v4978_v61 }
 0x560   : > { %v3454_v25 = vpop.f32.mrb[50].mxu0 }
 0x561   : > { %v4979_v57 = vadd.f32 %v3744_v9, %v3454_v25  ;;  %v4855_v1 = vpop.f32.mrb[51].mxu0 }
 0x563   : > { %3471 = vst.msk [vmem:[%s6914_s24 + $0x60] sm:$0xff] %vm3458_vm4, %v4979_v57 }
 0x564   : > { %s7047_s26 = smov (!%p3481_p8, %s3480_s26), 13 }
 0x565   : > { %s3745_s11 = sshll.u32 %s7047_s26, 7 }
 0x566   : > { %p3748_p9 = scmp.eq.s32.totalorder %s3745_s11, 0 }
 0x567   : > { %5437 = sdivrem.u32 (!%p3748_p9), %s7047_s26, 13 }
 0x568   : > { %3489 = sbr.rel (%p3748_p9) target bundleno = 1441 (0x5a1), region = 56 }
 0x570   : > { %s6955_s10 = spop.drf %5437 }
 0x571   : > { %p3749_p10 = scmp.le.s32.totalorder %s6955_s10, 0 }
 0x572   : > { %s7040_s6 = smov (!%p3749_p10), %s6949_s8  ;;  %s7041_s13 = smov (!%p3749_p10), %s6914_s24 }
 0x573   : > { %3693 = sbr.rel (%p3749_p10) target bundleno = 1412 (0x584), region = 132  ;;  %s6964_s12 = smov (!%p3749_p10), 0  }
 0x574   : > { %s6966_s14 = smov (!%p3749_p10), 0  }
 0x57a LB: >> { %v3577_v13 = vld [vmem:[%s5503_s13] sm:$0xff]  ;;  %v3579_v32 = vld [vmem:[%s5503_s13 + $0x8] sm:$0xff]  ;;  %v3581_v12 = vld [vmem:[%s5503_s13 + $0x10] sm:$0xff]  ;;  %s3603_s15 = sadd.s32 1, %s5507_s12  ;;  %s3571_s14 = sadd.s32 1, %s5511_s14   ;;  %s5511_s14 = sphi %s6966_s14, %s3571_s14   ;;  %s5507_s12 = sphi %s6964_s12, %s7042_s12   ;;  %s5503_s13 = sphi %s7041_s13, %s3608_s13   ;;  %s5499_s6 = sphi %s7040_s6, %s3609_s6  }
 0x57b   : >> { %3578 = vst [vmem:[%s5499_s6] sm:$0xff] %v3577_v13  ;;  %3580 = vst [vmem:[%s5499_s6 + $0x8] sm:$0xff] %v3579_v32  ;;  %v3583_v60 = vld [vmem:[%s5503_s13 + $0x18] sm:$0xff]  ;;  %v3585_v43 = vld [vmem:[%s5503_s13 + $0x20] sm:$0xff]  ;;  %p3604_p11 = scmp.ge.s32.totalorder %s3603_s15, %s6955_s10  ;;  %p3570_p12 = scmp.ge.s32.totalorder %s3571_s14, %s6955_s10 }
 0x57c   : >> { %3582 = vst [vmem:[%s5499_s6 + $0x10] sm:$0xff] %v3581_v12  ;;  %v3587_v11 = vld [vmem:[%s5503_s13 + $0x28] sm:$0xff]  ;;  %3584 = vst [vmem:[%s5499_s6 + $0x18] sm:$0xff] %v3583_v60  ;;  %v3589_v31 = vld [vmem:[%s5503_s13 + $0x30] sm:$0xff] }
 0x57d   : >> { %3586 = vst [vmem:[%s5499_s6 + $0x20] sm:$0xff] %v3585_v43  ;;  %3588 = vst [vmem:[%s5499_s6 + $0x28] sm:$0xff] %v3587_v11  ;;  %v3591_v38 = vld [vmem:[%s5503_s13 + $0x38] sm:$0xff]  ;;  %v3593_v54 = vld [vmem:[%s5503_s13 + $0x40] sm:$0xff]  ;;  %s7049_s15 = smov (%p3604_p11, %s3603_s15), 0  ;;  %3573 = sbr.rel (!%p3570_p12) target bundleno = 1402 (0x57a), region = 138 }
 0x57e   : >> { %3590 = vst [vmem:[%s5499_s6 + $0x30] sm:$0xff] %v3589_v31  ;;  %3592 = vst [vmem:[%s5499_s6 + $0x38] sm:$0xff] %v3591_v38  ;;  %v3595_v58 = vld [vmem:[%s5503_s13 + $0x48] sm:$0xff]  ;;  %v3597_v44 = vld [vmem:[%s5503_s13 + $0x50] sm:$0xff]  ;;  %s3606_s16 = smul.u32 104, %s7049_s15  ;;  %s7042_s12 = smov %s7049_s15 }
 0x57f   : >> { %3594 = vst [vmem:[%s5499_s6 + $0x40] sm:$0xff] %v3593_v54  ;;  %v3599_v52 = vld [vmem:[%s5503_s13 + $0x58] sm:$0xff]  ;;  %3596 = vst [vmem:[%s5499_s6 + $0x48] sm:$0xff] %v3595_v58  ;;  %v3601_v36 = vld [vmem:[%s5503_s13 + $0x60] sm:$0xff] }
 0x580   : >> { %3598 = vst [vmem:[%s5499_s6 + $0x50] sm:$0xff] %v3597_v44  ;;  %3600 = vst [vmem:[%s5499_s6 + $0x58] sm:$0xff] %v3599_v52  ;;  %s3608_s13 = scalar_lea.vmem %s6914_s24, %s3606_s16 [#allocation3]  }
 0x581   : >> { %3602 = vst [vmem:[%s5499_s6 + $0x60] sm:$0xff] %v3601_v36  ;;  %s3609_s6 = scalar_lea.vmem %s6949_s8, %s3606_s16  }
 0x584 PF: > { %5439 = sdivrem.u32 %s7047_s26, 13 }
 0x585   : > { %s3750_s17 = smul.u32 104, %s6955_s10 }
 0x587   : > { %s3614_s18 = scalar_lea.vmem %s6914_s24, %s3750_s17 [#allocation3]   ;;  %s3616_s19 = scalar_lea.vmem %s6949_s8, %s3750_s17  }
 0x58d   : > { %s5440_s20 = spop.drf %5439 }
 0x58e   : > { %p3752_p13 = scmp.le.s32.totalorder %s5440_s20, 0 }
 0x58f   : > { %s5513_s21 = smov (!%p3752_p13), %s3616_s19   ;;  %s5517_s22 = smov (!%p3752_p13), %s3614_s18  }
 0x590   : > { %3707 = sbr.rel (%p3752_p13) target bundleno = 1441 (0x5a1), region = 143  ;;  %s5521_s23 = smov (!%p3752_p13), 0  }
 0x591   : > { %s5525_s25 = smov (!%p3752_p13), 0  }
 0x597 LB: >> { %v3626_v59 = vld [vmem:[%s5519_s22] sm:$0xff]  ;;  %s3628_s28 = sadd.s32 1, %s5523_s23  ;;  %s3620_s25 = sadd.s32 1, %s5527_s25   ;;  %s5527_s25 = sphi %s5525_s25, %s3620_s25   ;;  %s5523_s23 = sphi %s5521_s23, %s5522_s23   ;;  %s5519_s22 = sphi %s5517_s22, %s3633_s22   ;;  %s5515_s21 = sphi %s5513_s21, %s3634_s21  }
 0x598   : >> { %3627 = vst [vmem:[%s5515_s21] sm:$0xff] %v3626_v59  ;;  %p3629_p0 = scmp.ge.s32.totalorder %s3628_s28, %s5440_s20  ;;  %p3619_p1 = scmp.ge.s32.totalorder %s3620_s25, %s5440_s20 }
 0x59a   : >> { %s7051_s28 = smov (%p3629_p0, %s3628_s28), 0  ;;  %3622 = sbr.rel (!%p3619_p1) target bundleno = 1431 (0x597), region = 149 }
 0x59b   : >> { %s3753_s24 = sshll.u32 %s7051_s28, 3  ;;  %s5522_s23 = smov %s7051_s28  }
 0x59c   : >> { %s3633_s22 = scalar_lea.vmem %s3614_s18, %s3753_s24 [#allocation3]   ;;  %s3634_s21 = scalar_lea.vmem %s3616_s19, %s3753_s24  }
 0x5a1 PF: > { %p16_p2 = scmp.ge.s32.totalorder %s5590_s29, 4   ;;  %s7043_s26 = smov %s5491_s27 }
 0x5a2   : > { %s7044_s27 = smov %s5598_s9  ;;  %s7045_s28 = smov %s5590_s29 }
 0x5a3   :  { %18 = sbr.rel (!%p16_p2) target bundleno = 5 (0x5), region = 160 }

</bundles_post_ra>
